<compile_context>
chip_gen: v7x
topology: tpu7x:2x2x1
jax: 0.10.0
libtpu: 0.0.40
codegen_flags: <defaults>
</compile_context>

<pallas_src>
import functools

import jax
import jax.numpy as jnp
import numpy as np
from jax import lax
from jax.experimental import pallas as pl
from jax.experimental.pallas import tpu as pltpu

LRELU_SLOPE = 0.2
BN_EPS = 1e-5
VMEM_LIMIT = 32 * 1024 * 1024   # explicit scoped-VMEM budget (fits v7x 64 MiB)


# ----------------------------- Pallas kernels ------------------------------ #
def _conv_tap_kernel(x_ref, w_ref, *rest, oh, ow, kh2, kw2, has_affine):
    """One batch element: conv (sum of shifted tap matmuls) + BN + LeakyReLU.

    x_ref: (1, HP, WP, C)    bf16  padded activation (stride already folded)
    w_ref: (KH2*KW2, C, OC)  bf16  per-tap weights (resident)
    scale/shift (optional):  (1, OC) f32 folded BatchNorm affine
    o_ref: (OH*OW, OC)       bf16
    """
    if has_affine:
        scale_ref, shift_ref, o_ref = rest
    else:
        (o_ref,) = rest
    c_in = x_ref.shape[-1]
    oc = w_ref.shape[-1]
    acc = jnp.zeros((oh * ow, oc), jnp.float32)
    # Statically unrolled tap loop: KH2*KW2 small MXU matmuls accumulated in
    # f32 vregs.  (A tap grid axis + pl.when accumulator is equivalent but
    # pays per-grid-step overhead that dominates these tiny matmuls.)
    for di in range(kh2):
        for dj in range(kw2):
            tap = x_ref[0, di:di + oh, dj:dj + ow, :]       # (OH, OW, C) bf16
            tap = tap.reshape(oh * ow, c_in)                # OW % 8 == 0
            acc = acc + jnp.dot(tap, w_ref[di * kw2 + dj],
                                preferred_element_type=jnp.float32)
    if has_affine:
        acc = acc * scale_ref[...] + shift_ref[...]
    acc = jnp.where(acc >= 0.0, acc, LRELU_SLOPE * acc)
    o_ref[...] = acc.astype(o_ref.dtype)


def _heads_kernel(f_ref, w_ref, b_ref, o_ref):
    """All prediction heads fused into one (N, F) @ (F, D_total) + bias."""
    y = jnp.dot(f_ref[...], w_ref[...], preferred_element_type=jnp.float32)
    o_ref[...] = y + b_ref[...]


# ------------------------------ call wrappers ------------------------------ #
def _conv_pallas(x, layer, oh, ow):
    """x: (N, HP, WP, C) bf16 in stride-1 form. Returns (N*OH*OW, OC) bf16."""
    n, hp, wp, c = x.shape
    w = layer['w']
    n_taps, c_w, oc = w.shape
    assert c_w == c, (c_w, c)
    has_affine = 'scale' in layer
    kernel = functools.partial(_conv_tap_kernel, oh=oh, ow=ow,
                               kh2=layer['kh2'], kw2=layer['kw2'],
                               has_affine=has_affine)
    in_specs = [
        pl.BlockSpec((1, hp, wp, c), lambda b: (b, 0, 0, 0)),   # per-batch tile
        pl.BlockSpec((n_taps, c, oc), lambda b: (0, 0, 0)),     # resident W
    ]
    args = [x, w]
    if has_affine:
        in_specs += [pl.BlockSpec((1, oc), lambda b: (0, 0)),
                     pl.BlockSpec((1, oc), lambda b: (0, 0))]
        args += [layer['scale'], layer['shift']]
    m = n * oh * ow
    cost = pl.CostEstimate(
        flops=2 * m * (n_taps * c) * oc,
        transcendentals=0,
        bytes_accessed=(x.size * x.dtype.itemsize + w.size * w.dtype.itemsize
                        + (2 * oc * 4 if has_affine else 0) + m * oc * 2))
    return pl.pallas_call(
        kernel,
        out_shape=jax.ShapeDtypeStruct((m, oc), jnp.bfloat16),
        grid=(n,),
        in_specs=in_specs,
        out_specs=pl.BlockSpec((oh * ow, oc), lambda b: (b, 0)),
        compiler_params=pltpu.CompilerParams(
            dimension_semantics=("parallel",),
            vmem_limit_bytes=VMEM_LIMIT),
        cost_estimate=cost,
    )(*args)


def _conv_layer(x_nhwc, layer):
    """Pad (+ space-to-depth for stride 2) in XLA, then call the conv kernel."""
    p = layer['pad']
    x = jnp.pad(x_nhwc, ((0, 0), (p, p), (p, p), (0, 0)))
    if layer['stride'] == 2:
        # Space-to-depth: stride-2 KxK conv -> stride-1 (K/2)x(K/2) conv over
        # 4x channels.  Pure relayout of the same bytes (no im2col blow-up);
        # the matching weight shuffle was precomputed in prepare_params().
        n, hp, wp, c = x.shape
        x = x.reshape(n, hp // 2, 2, wp // 2, 2, c)
        x = jnp.transpose(x, (0, 1, 3, 2, 4, 5))
        x = x.reshape(n, hp // 2, wp // 2, 4 * c)
    n, hp, wp, c = x.shape
    kh2, kw2 = layer['kh2'], layer['kw2']
    oh = hp - kh2 + 1
    ow = wp - kw2 + 1
    # Round the output width up to a sublane multiple so the in-kernel
    # (OH, OW, C) -> (OH*OW, C) collapse is a layout-trivial reshape.
    ow_pad = ((ow + 7) // 8) * 8
    if ow_pad != ow:
        extra = (kw2 - 1 + ow_pad) - wp
        x = jnp.pad(x, ((0, 0), (0, 0), (0, extra), (0, 0)))
    oc = layer['w'].shape[-1]
    y = _conv_pallas(x, layer, oh, ow_pad).reshape(n, oh, ow_pad, oc)
    if ow_pad != ow:
        y = y[:, :, :ow, :]
    return y


def _heads_pallas(feat, w_all, b_all):
    n, f = feat.shape
    _, d = w_all.shape
    cost = pl.CostEstimate(flops=2 * n * f * d, transcendentals=0,
                           bytes_accessed=n * f * 2 + f * d * 2 + d * 4
                                          + n * d * 4)
    return pl.pallas_call(
        _heads_kernel,
        out_shape=jax.ShapeDtypeStruct((n, d), jnp.float32),
        grid=(1,),
        in_specs=[pl.BlockSpec((n, f), lambda i: (0, 0)),
                  pl.BlockSpec((f, d), lambda i: (0, 0)),
                  pl.BlockSpec((1, d), lambda i: (0, 0))],
        out_specs=pl.BlockSpec((n, d), lambda i: (0, 0)),
        compiler_params=pltpu.CompilerParams(
            dimension_semantics=("arbitrary",),
            vmem_limit_bytes=VMEM_LIMIT),
        cost_estimate=cost,
    )(feat, w_all, b_all)


# ------------------- one-time parameter preparation ------------------------ #
def _prep_conv(w_oihw, stride, pad, bn):
    """Hoisted per-layer weight transform + BatchNorm fold (done once)."""
    oc, ic, kh, kw = w_oihw.shape
    if stride == 2:
        assert kh % 2 == 0 and kw % 2 == 0
        kh2, kw2 = kh // 2, kw // 2
        # (OC, IC, KH, KW) -> (di, dj, pi, pj, IC, OC) -> (kh2*kw2, 4*IC, OC),
        # matching the activation space-to-depth channel order (pi, pj, c).
        w = w_oihw.reshape(oc, ic, kh2, 2, kw2, 2)
        w = jnp.transpose(w, (2, 4, 3, 5, 1, 0)).reshape(kh2 * kw2, 4 * ic, oc)
    else:
        assert stride == 1
        kh2, kw2 = kh, kw
        w = jnp.transpose(w_oihw, (2, 3, 1, 0)).reshape(kh * kw, ic, oc)
    layer = {'w': w.astype(jnp.bfloat16), 'stride': stride, 'pad': pad,
             'kh2': kh2, 'kw2': kw2}
    if bn is not None:
        g, b, m, v = bn
        scale = (g / jnp.sqrt(v + BN_EPS)).astype(jnp.float32)
        shift = (b - m * scale).astype(jnp.float32)
        layer['scale'] = scale.reshape(1, oc)
        layer['shift'] = shift.reshape(1, oc)
    return layer


def prepare_params(params, i_size, head_dims):
    """One-time transform of PyTorch-layout params into kernel-ready form."""
    layers = [_prep_conv(params['conv0_w'], 2, 1, None)]          # no BN
    for (w, g, b, m, v) in params['extra']:
        layers.append(_prep_conv(w, 1, 1, (g, b, m, v)))
    for (w, g, b, m, v) in params['pyramid']:
        layers.append(_prep_conv(w, 2, 1, (g, b, m, v)))
    c_final = layers[-1]['w'].shape[-1]
    s_final = (i_size // 2) // (2 ** len(params['pyramid']))
    # Fuse all heads into one (F, D_total) matmul.  Permute the feature axis
    # once from PyTorch NCHW-flatten order to our NHWC-flatten order so no
    # runtime transpose is needed before the head kernel.
    ws, bs = [], []
    for (w, b) in [params['obj_head']] + list(params['measure_heads']):
        d, f = w.shape
        assert f == c_final * s_final * s_final
        wp = w.reshape(d, c_final, s_final, s_final)
        wp = jnp.transpose(wp, (0, 2, 3, 1)).reshape(d, f)
        ws.append(wp)
        bs.append(b)
    heads_w = jnp.concatenate(ws, axis=0).T.astype(jnp.bfloat16)   # (F, D_tot)
    heads_b = jnp.concatenate(bs, axis=0).reshape(1, -1).astype(jnp.float32)
    return {'conv_layers': layers, 'heads_w': heads_w, 'heads_b': heads_b,
            'head_dims': tuple(int(d) for d in head_dims)}


# --------------------------------- forward --------------------------------- #
def forward(prep, x_nchw):
    """Equivalent of CompetitionConvolutional.forward -> (obj, *measures)."""
    x = jnp.transpose(x_nchw, (0, 2, 3, 1)).astype(jnp.bfloat16)   # NHWC bf16
    for layer in prep['conv_layers']:
        x = _conv_layer(x, layer)
    n = x.shape[0]
    feat = x.reshape(n, -1)      # (N, OH*OW*C); head weights are pre-permuted
    y = _heads_pallas(feat, prep['heads_w'], prep['heads_b'])      # (N, D_tot)
    outs, off = [], 0
    for d in prep['head_dims']:
        outs.append(y[:, off:off + d])
        off += d
    return tuple(outs)


# ------------------------- pure-JAX reference ------------------------------ #
def reference_forward(params, x_nchw, dtype=jnp.float32):
    """Pure-JAX reference (eval-mode BN).  `dtype` controls matmul input
    precision so the bf16 kernel path can be checked at matched precision."""
    def conv(x, w_oihw, stride, pad):
        w = jnp.transpose(w_oihw, (2, 3, 1, 0)).astype(dtype)
        return lax.conv_general_dilated(
            x.astype(dtype), w, (stride, stride), [(pad, pad), (pad, pad)],
            dimension_numbers=('NHWC', 'HWIO', 'NHWC'),
            preferred_element_type=jnp.float32)

    def lrelu(v):
        return jnp.where(v >= 0, v, LRELU_SLOPE * v)

    x = jnp.transpose(x_nchw, (0, 2, 3, 1))
    x = lrelu(conv(x, params['conv0_w'], 2, 1))
    for wl, g, b, m, v in params['extra']:
        y = conv(x, wl, 1, 1)
        x = lrelu((y - m) / jnp.sqrt(v + BN_EPS) * g + b)
    for wl, g, b, m, v in params['pyramid']:
        y = conv(x, wl, 2, 1)
        x = lrelu((y - m) / jnp.sqrt(v + BN_EPS) * g + b)
    n, h, w, c = x.shape
    feat = jnp.transpose(x, (0, 3, 1, 2)).reshape(n, c * h * w).astype(dtype)
    outs = []
    for wl, bl in [params['obj_head']] + params['measure_heads']:
        y = jnp.dot(feat, wl.T.astype(dtype),
                    preferred_element_type=jnp.float32)
        outs.append(y + bl)
    return tuple(outs)


# --------------------------- deterministic params -------------------------- #
def build_params(key, i_size, nc, ndf, n_extra_layers, head_dims):
    assert i_size % 16 == 0, 'i_size has to be a multiple of 16'
    assert len(head_dims) > 1
    ks = iter(jax.random.split(key, 64))
    params = {}
    params['conv0_w'] = 0.1 * jax.random.normal(next(ks), (ndf, nc, 4, 4),
                                                jnp.float32)
    cndf, csize = ndf, i_size // 2
    extra = []
    for _ in range(n_extra_layers):
        w = 0.1 * jax.random.normal(next(ks), (cndf, cndf, 3, 3), jnp.float32)
        g = 1.0 + 0.1 * jax.random.normal(next(ks), (cndf,), jnp.float32)
        b = 0.1 * jax.random.normal(next(ks), (cndf,), jnp.float32)
        m = 0.1 * jax.random.normal(next(ks), (cndf,), jnp.float32)
        v = 0.5 + jax.random.uniform(next(ks), (cndf,), jnp.float32)
        extra.append((w, g, b, m, v))
    params['extra'] = extra
    pyr = []
    while csize > 4:
        in_f, out_f = cndf, cndf * 2
        w = 0.1 * jax.random.normal(next(ks), (out_f, in_f, 4, 4), jnp.float32)
        g = 1.0 + 0.1 * jax.random.normal(next(ks), (out_f,), jnp.float32)
        b = 0.1 * jax.random.normal(next(ks), (out_f,), jnp.float32)
        m = 0.1 * jax.random.normal(next(ks), (out_f,), jnp.float32)
        v = 0.5 + jax.random.uniform(next(ks), (out_f,), jnp.float32)
        pyr.append((w, g, b, m, v))
        cndf, csize = cndf * 2, csize // 2
    params['pyramid'] = pyr
    feature_size = cndf * 4 * 4
    params['obj_head'] = (
        0.05 * jax.random.normal(next(ks), (head_dims[0], feature_size),
                                 jnp.float32),
        0.05 * jax.random.normal(next(ks), (head_dims[0],), jnp.float32))
    params['measure_heads'] = [
        (0.05 * jax.random.normal(next(ks), (d, feature_size), jnp.float32),
         0.05 * jax.random.normal(next(ks), (d,), jnp.float32))
        for d in head_dims[1:]]
    return params


if __name__ == "__main__":
    key = jax.random.PRNGKey(0)
    pkey, xkey = jax.random.split(key)

    # small config: i_size=16 (one pyramid layer), nc=4, ndf=8, 1 extra layer,
    # head_dimensions=[1, 2, 2]  -> feature_size = 16 * 4 * 4 = 256
    i_size, nc, ndf, n_extra = 16, 4, 8, 1
    head_dims = [1, 2, 2]

    params = build_params(pkey, i_size, nc, ndf, n_extra, head_dims)
    x = jax.random.normal(xkey, (2, nc, i_size, i_size), jnp.float32)  # NCHW

    prep = prepare_params(params, i_size, head_dims)   # hoisted, done once
    fwd = jax.jit(lambda inp: forward(prep, inp))
    outs = jax.block_until_ready(fwd(x))

    # matched-precision reference (bf16 matmul inputs, f32 accumulation)
    refs_bf16 = reference_forward(params, x, dtype=jnp.bfloat16)
    # full-f32 reference: only bf16 quantization error expected vs this one
    refs_f32 = reference_forward(params, x, dtype=jnp.float32)

    assert len(outs) == len(head_dims)
    for o, rb, rf in zip(outs, refs_bf16, refs_f32):
        assert o.shape == rb.shape, (o.shape, rb.shape)
        np.testing.assert_allclose(np.asarray(o), np.asarray(rb),
                                   rtol=5e-3, atol=5e-3)
        np.testing.assert_allclose(np.asarray(o), np.asarray(rf),
                                   rtol=1e-1, atol=1e-1)

    print("KERNEL_OK")
</pallas_src>

<mosaic_0001>
module attributes {stable_mosaic.version = 11 : i64} {
  func.func @_conv_tap_kernel(%arg0: i32, %arg1: memref<1x5x9x32xbf16, #tpu.memory_space<vmem>>, %arg2: memref<4x32x16xbf16, #tpu.memory_space<vmem>>, %arg3: memref<1x16xf32, #tpu.memory_space<vmem>>, %arg4: memref<1x16xf32, #tpu.memory_space<vmem>>, %arg5: memref<32x16xbf16, #tpu.memory_space<vmem>>) attributes {dimension_semantics = [#tpu.dimension_semantics<parallel>], iteration_bounds = array<i64: 2>, scalar_prefetch = 0 : i64, scratch_operands = 0 : i64, tpu.core_type = #tpu.core_type<tc>, window_params = [{transform_indices = @transform_0, window_bounds = array<i64: 1, 5, 9, 32>}, {pipeline_mode = #tpu.pipeline_mode<synchronous>, transform_indices = @transform_1, window_bounds = array<i64: 4, 32, 16>}, {pipeline_mode = #tpu.pipeline_mode<synchronous>, transform_indices = @transform_2, window_bounds = array<i64: 1, 16>}, {pipeline_mode = #tpu.pipeline_mode<synchronous>, transform_indices = @transform_3, window_bounds = array<i64: 1, 16>}, {transform_indices = @transform_4, window_bounds = array<i64: 32, 16>}]} {
    %cst = arith.constant 0.000000e+00 : f32
    %0 = vector.broadcast %cst : f32 to vector<32x16xf32>
    %c0 = arith.constant 0 : index
    %c0_0 = arith.constant 0 : index
    %c0_1 = arith.constant 0 : index
    %c0_2 = arith.constant 0 : index
    %1 = vector.load %arg1[%c0, %c0_0, %c0_1, %c0_2] : memref<1x5x9x32xbf16, #tpu.memory_space<vmem>>, vector<1x4x8x32xbf16>
    %2 = vector.shape_cast %1 : vector<1x4x8x32xbf16> to vector<4x8x32xbf16>
    %3 = vector.shape_cast %2 : vector<4x8x32xbf16> to vector<32x32xbf16>
    %c0_3 = arith.constant 0 : index
    %c0_4 = arith.constant 0 : index
    %c0_5 = arith.constant 0 : index
    %4 = vector.load %arg2[%c0_3, %c0_4, %c0_5] : memref<4x32x16xbf16, #tpu.memory_space<vmem>>, vector<1x32x16xbf16>
    %5 = vector.shape_cast %4 : vector<1x32x16xbf16> to vector<32x16xbf16>
    %cst_6 = arith.constant dense<0.000000e+00> : vector<32x16xf32>
    %6 = tpu.matmul %3, %5, %cst_6 {dimension_numbers = #tpu.dot_dimension_numbers<[1], [0], [0], [1], [0, 0, 1, 1], [], []>} : vector<32x32xbf16>, vector<32x16xbf16>, vector<32x16xf32> -> vector<32x16xf32>
    %7 = arith.addf %0, %6 : vector<32x16xf32>
    %c0_7 = arith.constant 0 : index
    %c0_8 = arith.constant 0 : index
    %c1 = arith.constant 1 : index
    %c0_9 = arith.constant 0 : index
    %8 = vector.load %arg1[%c0_7, %c0_8, %c1, %c0_9] : memref<1x5x9x32xbf16, #tpu.memory_space<vmem>>, vector<1x4x8x32xbf16>
    %9 = vector.shape_cast %8 : vector<1x4x8x32xbf16> to vector<4x8x32xbf16>
    %10 = vector.shape_cast %9 : vector<4x8x32xbf16> to vector<32x32xbf16>
    %c1_10 = arith.constant 1 : index
    %c0_11 = arith.constant 0 : index
    %c0_12 = arith.constant 0 : index
    %11 = vector.load %arg2[%c1_10, %c0_11, %c0_12] : memref<4x32x16xbf16, #tpu.memory_space<vmem>>, vector<1x32x16xbf16>
    %12 = vector.shape_cast %11 : vector<1x32x16xbf16> to vector<32x16xbf16>
    %cst_13 = arith.constant dense<0.000000e+00> : vector<32x16xf32>
    %13 = tpu.matmul %10, %12, %cst_13 {dimension_numbers = #tpu.dot_dimension_numbers<[1], [0], [0], [1], [0, 0, 1, 1], [], []>} : vector<32x32xbf16>, vector<32x16xbf16>, vector<32x16xf32> -> vector<32x16xf32>
    %14 = arith.addf %7, %13 : vector<32x16xf32>
    %c0_14 = arith.constant 0 : index
    %c1_15 = arith.constant 1 : index
    %c0_16 = arith.constant 0 : index
    %c0_17 = arith.constant 0 : index
    %15 = vector.load %arg1[%c0_14, %c1_15, %c0_16, %c0_17] : memref<1x5x9x32xbf16, #tpu.memory_space<vmem>>, vector<1x4x8x32xbf16>
    %16 = vector.shape_cast %15 : vector<1x4x8x32xbf16> to vector<4x8x32xbf16>
    %17 = vector.shape_cast %16 : vector<4x8x32xbf16> to vector<32x32xbf16>
    %c2 = arith.constant 2 : index
    %c0_18 = arith.constant 0 : index
    %c0_19 = arith.constant 0 : index
    %18 = vector.load %arg2[%c2, %c0_18, %c0_19] : memref<4x32x16xbf16, #tpu.memory_space<vmem>>, vector<1x32x16xbf16>
    %19 = vector.shape_cast %18 : vector<1x32x16xbf16> to vector<32x16xbf16>
    %cst_20 = arith.constant dense<0.000000e+00> : vector<32x16xf32>
    %20 = tpu.matmul %17, %19, %cst_20 {dimension_numbers = #tpu.dot_dimension_numbers<[1], [0], [0], [1], [0, 0, 1, 1], [], []>} : vector<32x32xbf16>, vector<32x16xbf16>, vector<32x16xf32> -> vector<32x16xf32>
    %21 = arith.addf %14, %20 : vector<32x16xf32>
    %c0_21 = arith.constant 0 : index
    %c1_22 = arith.constant 1 : index
    %c1_23 = arith.constant 1 : index
    %c0_24 = arith.constant 0 : index
    %22 = vector.load %arg1[%c0_21, %c1_22, %c1_23, %c0_24] : memref<1x5x9x32xbf16, #tpu.memory_space<vmem>>, vector<1x4x8x32xbf16>
    %23 = vector.shape_cast %22 : vector<1x4x8x32xbf16> to vector<4x8x32xbf16>
    %24 = vector.shape_cast %23 : vector<4x8x32xbf16> to vector<32x32xbf16>
    %c3 = arith.constant 3 : index
    %c0_25 = arith.constant 0 : index
    %c0_26 = arith.constant 0 : index
    %25 = vector.load %arg2[%c3, %c0_25, %c0_26] : memref<4x32x16xbf16, #tpu.memory_space<vmem>>, vector<1x32x16xbf16>
    %26 = vector.shape_cast %25 : vector<1x32x16xbf16> to vector<32x16xbf16>
    %cst_27 = arith.constant dense<0.000000e+00> : vector<32x16xf32>
    %27 = tpu.matmul %24, %26, %cst_27 {dimension_numbers = #tpu.dot_dimension_numbers<[1], [0], [0], [1], [0, 0, 1, 1], [], []>} : vector<32x32xbf16>, vector<32x16xbf16>, vector<32x16xf32> -> vector<32x16xf32>
    %28 = arith.addf %21, %27 : vector<32x16xf32>
    %c0_28 = arith.constant 0 : index
    %c0_29 = arith.constant 0 : index
    %29 = vector.load %arg3[%c0_28, %c0_29] : memref<1x16xf32, #tpu.memory_space<vmem>>, vector<1x16xf32>
    %30 = vector.broadcast %29 : vector<1x16xf32> to vector<32x16xf32>
    %31 = arith.mulf %28, %30 : vector<32x16xf32>
    %c0_30 = arith.constant 0 : index
    %c0_31 = arith.constant 0 : index
    %32 = vector.load %arg4[%c0_30, %c0_31] : memref<1x16xf32, #tpu.memory_space<vmem>>, vector<1x16xf32>
    %33 = vector.broadcast %32 : vector<1x16xf32> to vector<32x16xf32>
    %34 = arith.addf %31, %33 : vector<32x16xf32>
    %cst_32 = arith.constant 0.000000e+00 : f32
    %35 = vector.broadcast %cst_32 : f32 to vector<32x16xf32>
    %36 = arith.cmpf oge, %34, %35 : vector<32x16xf32>
    %cst_33 = arith.constant 2.000000e-01 : f32
    %37 = vector.broadcast %cst_33 : f32 to vector<32x16xf32>
    %38 = arith.mulf %37, %34 : vector<32x16xf32>
    %39 = arith.select %36, %34, %38 : vector<32x16xi1>, vector<32x16xf32>
    %40 = arith.truncf %39 : vector<32x16xf32> to vector<32x16xbf16>
    %c0_34 = arith.constant 0 : index
    %c0_35 = arith.constant 0 : index
    %41 = vector.load %arg5[%c0_34, %c0_35] : memref<32x16xbf16, #tpu.memory_space<vmem>>, vector<32x16xbf16>
    tpu.vector_store %arg5[%c0_34, %c0_35], %40 {strides = array<i32>} : memref<32x16xbf16, #tpu.memory_space<vmem>>, vector<32x16xbf16>,
    return
  }
  func.func @transform_0(%arg0: i32) -> (i32, i32, i32, i32) {
    %c0_i32 = arith.constant 0 : i32
    %c0_i32_0 = arith.constant 0 : i32
    %c0_i32_1 = arith.constant 0 : i32
    %c0_i32_2 = arith.constant 0 : i32
    return %arg0, %c0_i32, %c0_i32_0, %c0_i32_1 : i32, i32, i32, i32
  }
  func.func @transform_1(%arg0: i32) -> (i32, i32, i32) {
    %c0_i32 = arith.constant 0 : i32
    %c0_i32_0 = arith.constant 0 : i32
    %c0_i32_1 = arith.constant 0 : i32
    %c0_i32_2 = arith.constant 0 : i32
    return %c0_i32, %c0_i32_0, %c0_i32_1 : i32, i32, i32
  }
  func.func @transform_2(%arg0: i32) -> (i32, i32) {
    %c0_i32 = arith.constant 0 : i32
    %c0_i32_0 = arith.constant 0 : i32
    %c0_i32_1 = arith.constant 0 : i32
    return %c0_i32, %c0_i32_0 : i32, i32
  }
  func.func @transform_3(%arg0: i32) -> (i32, i32) {
    %c0_i32 = arith.constant 0 : i32
    %c0_i32_0 = arith.constant 0 : i32
    %c0_i32_1 = arith.constant 0 : i32
    return %c0_i32, %c0_i32_0 : i32, i32
  }
  func.func @transform_4(%arg0: i32) -> (i32, i32) {
    %c0_i32 = arith.constant 0 : i32
    %c0_i32_0 = arith.constant 0 : i32
    return %arg0, %c0_i32 : i32, i32
  }
}

module attributes {stable_mosaic.version = 11 : i64} {
  func.func @_conv_tap_kernel(%arg0: i32, %arg1: memref<1x9x9x16xbf16, #tpu.memory_space<vmem>>, %arg2: memref<4x16x8xbf16, #tpu.memory_space<vmem>>, %arg3: memref<64x8xbf16, #tpu.memory_space<vmem>>) attributes {dimension_semantics = [#tpu.dimension_semantics<parallel>], iteration_bounds = array<i64: 2>, scalar_prefetch = 0 : i64, scratch_operands = 0 : i64, tpu.core_type = #tpu.core_type<tc>, window_params = [{transform_indices = @transform_0, window_bounds = array<i64: 1, 9, 9, 16>}, {pipeline_mode = #tpu.pipeline_mode<synchronous>, transform_indices = @transform_1, window_bounds = array<i64: 4, 16, 8>}, {transform_indices = @transform_2, window_bounds = array<i64: 64, 8>}]} {
    %cst = arith.constant 0.000000e+00 : f32
    %0 = vector.broadcast %cst : f32 to vector<64x8xf32>
    %c0 = arith.constant 0 : index
    %c0_0 = arith.constant 0 : index
    %c0_1 = arith.constant 0 : index
    %c0_2 = arith.constant 0 : index
    %1 = vector.load %arg1[%c0, %c0_0, %c0_1, %c0_2] : memref<1x9x9x16xbf16, #tpu.memory_space<vmem>>, vector<1x8x8x16xbf16>
    %2 = vector.shape_cast %1 : vector<1x8x8x16xbf16> to vector<8x8x16xbf16>
    %3 = vector.shape_cast %2 : vector<8x8x16xbf16> to vector<64x16xbf16>
    %c0_3 = arith.constant 0 : index
    %c0_4 = arith.constant 0 : index
    %c0_5 = arith.constant 0 : index
    %4 = vector.load %arg2[%c0_3, %c0_4, %c0_5] : memref<4x16x8xbf16, #tpu.memory_space<vmem>>, vector<1x16x8xbf16>
    %5 = vector.shape_cast %4 : vector<1x16x8xbf16> to vector<16x8xbf16>
    %cst_6 = arith.constant dense<0.000000e+00> : vector<64x8xf32>
    %6 = tpu.matmul %3, %5, %cst_6 {dimension_numbers = #tpu.dot_dimension_numbers<[1], [0], [0], [1], [0, 0, 1, 1], [], []>} : vector<64x16xbf16>, vector<16x8xbf16>, vector<64x8xf32> -> vector<64x8xf32>
    %7 = arith.addf %0, %6 : vector<64x8xf32>
    %c0_7 = arith.constant 0 : index
    %c0_8 = arith.constant 0 : index
    %c1 = arith.constant 1 : index
    %c0_9 = arith.constant 0 : index
    %8 = vector.load %arg1[%c0_7, %c0_8, %c1, %c0_9] : memref<1x9x9x16xbf16, #tpu.memory_space<vmem>>, vector<1x8x8x16xbf16>
    %9 = vector.shape_cast %8 : vector<1x8x8x16xbf16> to vector<8x8x16xbf16>
    %10 = vector.shape_cast %9 : vector<8x8x16xbf16> to vector<64x16xbf16>
    %c1_10 = arith.constant 1 : index
    %c0_11 = arith.constant 0 : index
    %c0_12 = arith.constant 0 : index
    %11 = vector.load %arg2[%c1_10, %c0_11, %c0_12] : memref<4x16x8xbf16, #tpu.memory_space<vmem>>, vector<1x16x8xbf16>
    %12 = vector.shape_cast %11 : vector<1x16x8xbf16> to vector<16x8xbf16>
    %cst_13 = arith.constant dense<0.000000e+00> : vector<64x8xf32>
    %13 = tpu.matmul %10, %12, %cst_13 {dimension_numbers = #tpu.dot_dimension_numbers<[1], [0], [0], [1], [0, 0, 1, 1], [], []>} : vector<64x16xbf16>, vector<16x8xbf16>, vector<64x8xf32> -> vector<64x8xf32>
    %14 = arith.addf %7, %13 : vector<64x8xf32>
    %c0_14 = arith.constant 0 : index
    %c1_15 = arith.constant 1 : index
    %c0_16 = arith.constant 0 : index
    %c0_17 = arith.constant 0 : index
    %15 = vector.load %arg1[%c0_14, %c1_15, %c0_16, %c0_17] : memref<1x9x9x16xbf16, #tpu.memory_space<vmem>>, vector<1x8x8x16xbf16>
    %16 = vector.shape_cast %15 : vector<1x8x8x16xbf16> to vector<8x8x16xbf16>
    %17 = vector.shape_cast %16 : vector<8x8x16xbf16> to vector<64x16xbf16>
    %c2 = arith.constant 2 : index
    %c0_18 = arith.constant 0 : index
    %c0_19 = arith.constant 0 : index
    %18 = vector.load %arg2[%c2, %c0_18, %c0_19] : memref<4x16x8xbf16, #tpu.memory_space<vmem>>, vector<1x16x8xbf16>
    %19 = vector.shape_cast %18 : vector<1x16x8xbf16> to vector<16x8xbf16>
    %cst_20 = arith.constant dense<0.000000e+00> : vector<64x8xf32>
    %20 = tpu.matmul %17, %19, %cst_20 {dimension_numbers = #tpu.dot_dimension_numbers<[1], [0], [0], [1], [0, 0, 1, 1], [], []>} : vector<64x16xbf16>, vector<16x8xbf16>, vector<64x8xf32> -> vector<64x8xf32>
    %21 = arith.addf %14, %20 : vector<64x8xf32>
    %c0_21 = arith.constant 0 : index
    %c1_22 = arith.constant 1 : index
    %c1_23 = arith.constant 1 : index
    %c0_24 = arith.constant 0 : index
    %22 = vector.load %arg1[%c0_21, %c1_22, %c1_23, %c0_24] : memref<1x9x9x16xbf16, #tpu.memory_space<vmem>>, vector<1x8x8x16xbf16>
    %23 = vector.shape_cast %22 : vector<1x8x8x16xbf16> to vector<8x8x16xbf16>
    %24 = vector.shape_cast %23 : vector<8x8x16xbf16> to vector<64x16xbf16>
    %c3 = arith.constant 3 : index
    %c0_25 = arith.constant 0 : index
    %c0_26 = arith.constant 0 : index
    %25 = vector.load %arg2[%c3, %c0_25, %c0_26] : memref<4x16x8xbf16, #tpu.memory_space<vmem>>, vector<1x16x8xbf16>
    %26 = vector.shape_cast %25 : vector<1x16x8xbf16> to vector<16x8xbf16>
    %cst_27 = arith.constant dense<0.000000e+00> : vector<64x8xf32>
    %27 = tpu.matmul %24, %26, %cst_27 {dimension_numbers = #tpu.dot_dimension_numbers<[1], [0], [0], [1], [0, 0, 1, 1], [], []>} : vector<64x16xbf16>, vector<16x8xbf16>, vector<64x8xf32> -> vector<64x8xf32>
    %28 = arith.addf %21, %27 : vector<64x8xf32>
    %cst_28 = arith.constant 0.000000e+00 : f32
    %29 = vector.broadcast %cst_28 : f32 to vector<64x8xf32>
    %30 = arith.cmpf oge, %28, %29 : vector<64x8xf32>
    %cst_29 = arith.constant 2.000000e-01 : f32
    %31 = vector.broadcast %cst_29 : f32 to vector<64x8xf32>
    %32 = arith.mulf %31, %28 : vector<64x8xf32>
    %33 = arith.select %30, %28, %32 : vector<64x8xi1>, vector<64x8xf32>
    %34 = arith.truncf %33 : vector<64x8xf32> to vector<64x8xbf16>
    %c0_30 = arith.constant 0 : index
    %c0_31 = arith.constant 0 : index
    %35 = vector.load %arg3[%c0_30, %c0_31] : memref<64x8xbf16, #tpu.memory_space<vmem>>, vector<64x8xbf16>
    tpu.vector_store %arg3[%c0_30, %c0_31], %34 {strides = array<i32>} : memref<64x8xbf16, #tpu.memory_space<vmem>>, vector<64x8xbf16>,
    return
  }
  func.func @transform_0(%arg0: i32) -> (i32, i32, i32, i32) {
    %c0_i32 = arith.constant 0 : i32
    %c0_i32_0 = arith.constant 0 : i32
    %c0_i32_1 = arith.constant 0 : i32
    %c0_i32_2 = arith.constant 0 : i32
    return %arg0, %c0_i32, %c0_i32_0, %c0_i32_1 : i32, i32, i32, i32
  }
  func.func @transform_1(%arg0: i32) -> (i32, i32, i32) {
    %c0_i32 = arith.constant 0 : i32
    %c0_i32_0 = arith.constant 0 : i32
    %c0_i32_1 = arith.constant 0 : i32
    %c0_i32_2 = arith.constant 0 : i32
    return %c0_i32, %c0_i32_0, %c0_i32_1 : i32, i32, i32
  }
  func.func @transform_2(%arg0: i32) -> (i32, i32) {
    %c0_i32 = arith.constant 0 : i32
    %c0_i32_0 = arith.constant 0 : i32
    return %arg0, %c0_i32 : i32, i32
  }
}

module attributes {stable_mosaic.version = 11 : i64} {
  func.func @_conv_tap_kernel(%arg0: i32, %arg1: memref<1x10x10x8xbf16, #tpu.memory_space<vmem>>, %arg2: memref<9x8x8xbf16, #tpu.memory_space<vmem>>, %arg3: memref<1x8xf32, #tpu.memory_space<vmem>>, %arg4: memref<1x8xf32, #tpu.memory_space<vmem>>, %arg5: memref<64x8xbf16, #tpu.memory_space<vmem>>) attributes {dimension_semantics = [#tpu.dimension_semantics<parallel>], iteration_bounds = array<i64: 2>, scalar_prefetch = 0 : i64, scratch_operands = 0 : i64, tpu.core_type = #tpu.core_type<tc>, window_params = [{transform_indices = @transform_0, window_bounds = array<i64: 1, 10, 10, 8>}, {pipeline_mode = #tpu.pipeline_mode<synchronous>, transform_indices = @transform_1, window_bounds = array<i64: 9, 8, 8>}, {pipeline_mode = #tpu.pipeline_mode<synchronous>, transform_indices = @transform_2, window_bounds = array<i64: 1, 8>}, {pipeline_mode = #tpu.pipeline_mode<synchronous>, transform_indices = @transform_3, window_bounds = array<i64: 1, 8>}, {transform_indices = @transform_4, window_bounds = array<i64: 64, 8>}]} {
    %cst = arith.constant 0.000000e+00 : f32
    %0 = vector.broadcast %cst : f32 to vector<64x8xf32>
    %c0 = arith.constant 0 : index
    %c0_0 = arith.constant 0 : index
    %c0_1 = arith.constant 0 : index
    %c0_2 = arith.constant 0 : index
    %1 = vector.load %arg1[%c0, %c0_0, %c0_1, %c0_2] : memref<1x10x10x8xbf16, #tpu.memory_space<vmem>>, vector<1x8x8x8xbf16>
    %2 = vector.shape_cast %1 : vector<1x8x8x8xbf16> to vector<8x8x8xbf16>
    %3 = vector.shape_cast %2 : vector<8x8x8xbf16> to vector<64x8xbf16>
    %c0_3 = arith.constant 0 : index
    %c0_4 = arith.constant 0 : index
    %c0_5 = arith.constant 0 : index
    %4 = vector.load %arg2[%c0_3, %c0_4, %c0_5] : memref<9x8x8xbf16, #tpu.memory_space<vmem>>, vector<1x8x8xbf16>
    %5 = vector.shape_cast %4 : vector<1x8x8xbf16> to vector<8x8xbf16>
    %cst_6 = arith.constant dense<0.000000e+00> : vector<64x8xf32>
    %6 = tpu.matmul %3, %5, %cst_6 {dimension_numbers = #tpu.dot_dimension_numbers<[1], [0], [0], [1], [0, 0, 1, 1], [], []>} : vector<64x8xbf16>, vector<8x8xbf16>, vector<64x8xf32> -> vector<64x8xf32>
    %7 = arith.addf %0, %6 : vector<64x8xf32>
    %c0_7 = arith.constant 0 : index
    %c0_8 = arith.constant 0 : index
    %c1 = arith.constant 1 : index
    %c0_9 = arith.constant 0 : index
    %8 = vector.load %arg1[%c0_7, %c0_8, %c1, %c0_9] : memref<1x10x10x8xbf16, #tpu.memory_space<vmem>>, vector<1x8x8x8xbf16>
    %9 = vector.shape_cast %8 : vector<1x8x8x8xbf16> to vector<8x8x8xbf16>
    %10 = vector.shape_cast %9 : vector<8x8x8xbf16> to vector<64x8xbf16>
    %c1_10 = arith.constant 1 : index
    %c0_11 = arith.constant 0 : index
    %c0_12 = arith.constant 0 : index
    %11 = vector.load %arg2[%c1_10, %c0_11, %c0_12] : memref<9x8x8xbf16, #tpu.memory_space<vmem>>, vector<1x8x8xbf16>
    %12 = vector.shape_cast %11 : vector<1x8x8xbf16> to vector<8x8xbf16>
    %cst_13 = arith.constant dense<0.000000e+00> : vector<64x8xf32>
    %13 = tpu.matmul %10, %12, %cst_13 {dimension_numbers = #tpu.dot_dimension_numbers<[1], [0], [0], [1], [0, 0, 1, 1], [], []>} : vector<64x8xbf16>, vector<8x8xbf16>, vector<64x8xf32> -> vector<64x8xf32>
    %14 = arith.addf %7, %13 : vector<64x8xf32>
    %c0_14 = arith.constant 0 : index
    %c0_15 = arith.constant 0 : index
    %c2 = arith.constant 2 : index
    %c0_16 = arith.constant 0 : index
    %15 = vector.load %arg1[%c0_14, %c0_15, %c2, %c0_16] : memref<1x10x10x8xbf16, #tpu.memory_space<vmem>>, vector<1x8x8x8xbf16>
    %16 = vector.shape_cast %15 : vector<1x8x8x8xbf16> to vector<8x8x8xbf16>
    %17 = vector.shape_cast %16 : vector<8x8x8xbf16> to vector<64x8xbf16>
    %c2_17 = arith.constant 2 : index
    %c0_18 = arith.constant 0 : index
    %c0_19 = arith.constant 0 : index
    %18 = vector.load %arg2[%c2_17, %c0_18, %c0_19] : memref<9x8x8xbf16, #tpu.memory_space<vmem>>, vector<1x8x8xbf16>
    %19 = vector.shape_cast %18 : vector<1x8x8xbf16> to vector<8x8xbf16>
    %cst_20 = arith.constant dense<0.000000e+00> : vector<64x8xf32>
    %20 = tpu.matmul %17, %19, %cst_20 {dimension_numbers = #tpu.dot_dimension_numbers<[1], [0], [0], [1], [0, 0, 1, 1], [], []>} : vector<64x8xbf16>, vector<8x8xbf16>, vector<64x8xf32> -> vector<64x8xf32>
    %21 = arith.addf %14, %20 : vector<64x8xf32>
    %c0_21 = arith.constant 0 : index
    %c1_22 = arith.constant 1 : index
    %c0_23 = arith.constant 0 : index
    %c0_24 = arith.constant 0 : index
    %22 = vector.load %arg1[%c0_21, %c1_22, %c0_23, %c0_24] : memref<1x10x10x8xbf16, #tpu.memory_space<vmem>>, vector<1x8x8x8xbf16>
    %23 = vector.shape_cast %22 : vector<1x8x8x8xbf16> to vector<8x8x8xbf16>
    %24 = vector.shape_cast %23 : vector<8x8x8xbf16> to vector<64x8xbf16>
    %c3 = arith.constant 3 : index
    %c0_25 = arith.constant 0 : index
    %c0_26 = arith.constant 0 : index
    %25 = vector.load %arg2[%c3, %c0_25, %c0_26] : memref<9x8x8xbf16, #tpu.memory_space<vmem>>, vector<1x8x8xbf16>
    %26 = vector.shape_cast %25 : vector<1x8x8xbf16> to vector<8x8xbf16>
    %cst_27 = arith.constant dense<0.000000e+00> : vector<64x8xf32>
    %27 = tpu.matmul %24, %26, %cst_27 {dimension_numbers = #tpu.dot_dimension_numbers<[1], [0], [0], [1], [0, 0, 1, 1], [], []>} : vector<64x8xbf16>, vector<8x8xbf16>, vector<64x8xf32> -> vector<64x8xf32>
    %28 = arith.addf %21, %27 : vector<64x8xf32>
    %c0_28 = arith.constant 0 : index
    %c1_29 = arith.constant 1 : index
    %c1_30 = arith.constant 1 : index
    %c0_31 = arith.constant 0 : index
    %29 = vector.load %arg1[%c0_28, %c1_29, %c1_30, %c0_31] : memref<1x10x10x8xbf16, #tpu.memory_space<vmem>>, vector<1x8x8x8xbf16>
    %30 = vector.shape_cast %29 : vector<1x8x8x8xbf16> to vector<8x8x8xbf16>
    %31 = vector.shape_cast %30 : vector<8x8x8xbf16> to vector<64x8xbf16>
    %c4 = arith.constant 4 : index
    %c0_32 = arith.constant 0 : index
    %c0_33 = arith.constant 0 : index
    %32 = vector.load %arg2[%c4, %c0_32, %c0_33] : memref<9x8x8xbf16, #tpu.memory_space<vmem>>, vector<1x8x8xbf16>
    %33 = vector.shape_cast %32 : vector<1x8x8xbf16> to vector<8x8xbf16>
    %cst_34 = arith.constant dense<0.000000e+00> : vector<64x8xf32>
    %34 = tpu.matmul %31, %33, %cst_34 {dimension_numbers = #tpu.dot_dimension_numbers<[1], [0], [0], [1], [0, 0, 1, 1], [], []>} : vector<64x8xbf16>, vector<8x8xbf16>, vector<64x8xf32> -> vector<64x8xf32>
    %35 = arith.addf %28, %34 : vector<64x8xf32>
    %c0_35 = arith.constant 0 : index
    %c1_36 = arith.constant 1 : index
    %c2_37 = arith.constant 2 : index
    %c0_38 = arith.constant 0 : index
    %36 = vector.load %arg1[%c0_35, %c1_36, %c2_37, %c0_38] : memref<1x10x10x8xbf16, #tpu.memory_space<vmem>>, vector<1x8x8x8xbf16>
    %37 = vector.shape_cast %36 : vector<1x8x8x8xbf16> to vector<8x8x8xbf16>
    %38 = vector.shape_cast %37 : vector<8x8x8xbf16> to vector<64x8xbf16>
    %c5 = arith.constant 5 : index
    %c0_39 = arith.constant 0 : index
    %c0_40 = arith.constant 0 : index
    %39 = vector.load %arg2[%c5, %c0_39, %c0_40] : memref<9x8x8xbf16, #tpu.memory_space<vmem>>, vector<1x8x8xbf16>
    %40 = vector.shape_cast %39 : vector<1x8x8xbf16> to vector<8x8xbf16>
    %cst_41 = arith.constant dense<0.000000e+00> : vector<64x8xf32>
    %41 = tpu.matmul %38, %40, %cst_41 {dimension_numbers = #tpu.dot_dimension_numbers<[1], [0], [0], [1], [0, 0, 1, 1], [], []>} : vector<64x8xbf16>, vector<8x8xbf16>, vector<64x8xf32> -> vector<64x8xf32>
    %42 = arith.addf %35, %41 : vector<64x8xf32>
    %c0_42 = arith.constant 0 : index
    %c2_43 = arith.constant 2 : index
    %c0_44 = arith.constant 0 : index
    %c0_45 = arith.constant 0 : index
    %43 = vector.load %arg1[%c0_42, %c2_43, %c0_44, %c0_45] : memref<1x10x10x8xbf16, #tpu.memory_space<vmem>>, vector<1x8x8x8xbf16>
    %44 = vector.shape_cast %43 : vector<1x8x8x8xbf16> to vector<8x8x8xbf16>
    %45 = vector.shape_cast %44 : vector<8x8x8xbf16> to vector<64x8xbf16>
    %c6 = arith.constant 6 : index
    %c0_46 = arith.constant 0 : index
    %c0_47 = arith.constant 0 : index
    %46 = vector.load %arg2[%c6, %c0_46, %c0_47] : memref<9x8x8xbf16, #tpu.memory_space<vmem>>, vector<1x8x8xbf16>
    %47 = vector.shape_cast %46 : vector<1x8x8xbf16> to vector<8x8xbf16>
    %cst_48 = arith.constant dense<0.000000e+00> : vector<64x8xf32>
    %48 = tpu.matmul %45, %47, %cst_48 {dimension_numbers = #tpu.dot_dimension_numbers<[1], [0], [0], [1], [0, 0, 1, 1], [], []>} : vector<64x8xbf16>, vector<8x8xbf16>, vector<64x8xf32> -> vector<64x8xf32>
    %49 = arith.addf %42, %48 : vector<64x8xf32>
    %c0_49 = arith.constant 0 : index
    %c2_50 = arith.constant 2 : index
    %c1_51 = arith.constant 1 : index
    %c0_52 = arith.constant 0 : index
    %50 = vector.load %arg1[%c0_49, %c2_50, %c1_51, %c0_52] : memref<1x10x10x8xbf16, #tpu.memory_space<vmem>>, vector<1x8x8x8xbf16>
    %51 = vector.shape_cast %50 : vector<1x8x8x8xbf16> to vector<8x8x8xbf16>
    %52 = vector.shape_cast %51 : vector<8x8x8xbf16> to vector<64x8xbf16>
    %c7 = arith.constant 7 : index
    %c0_53 = arith.constant 0 : index
    %c0_54 = arith.constant 0 : index
    %53 = vector.load %arg2[%c7, %c0_53, %c0_54] : memref<9x8x8xbf16, #tpu.memory_space<vmem>>, vector<1x8x8xbf16>
    %54 = vector.shape_cast %53 : vector<1x8x8xbf16> to vector<8x8xbf16>
    %cst_55 = arith.constant dense<0.000000e+00> : vector<64x8xf32>
    %55 = tpu.matmul %52, %54, %cst_55 {dimension_numbers = #tpu.dot_dimension_numbers<[1], [0], [0], [1], [0, 0, 1, 1], [], []>} : vector<64x8xbf16>, vector<8x8xbf16>, vector<64x8xf32> -> vector<64x8xf32>
    %56 = arith.addf %49, %55 : vector<64x8xf32>
    %c0_56 = arith.constant 0 : index
    %c2_57 = arith.constant 2 : index
    %c2_58 = arith.constant 2 : index
    %c0_59 = arith.constant 0 : index
    %57 = vector.load %arg1[%c0_56, %c2_57, %c2_58, %c0_59] : memref<1x10x10x8xbf16, #tpu.memory_space<vmem>>, vector<1x8x8x8xbf16>
    %58 = vector.shape_cast %57 : vector<1x8x8x8xbf16> to vector<8x8x8xbf16>
    %59 = vector.shape_cast %58 : vector<8x8x8xbf16> to vector<64x8xbf16>
    %c8 = arith.constant 8 : index
    %c0_60 = arith.constant 0 : index
    %c0_61 = arith.constant 0 : index
    %60 = vector.load %arg2[%c8, %c0_60, %c0_61] : memref<9x8x8xbf16, #tpu.memory_space<vmem>>, vector<1x8x8xbf16>
    %61 = vector.shape_cast %60 : vector<1x8x8xbf16> to vector<8x8xbf16>
    %cst_62 = arith.constant dense<0.000000e+00> : vector<64x8xf32>
    %62 = tpu.matmul %59, %61, %cst_62 {dimension_numbers = #tpu.dot_dimension_numbers<[1], [0], [0], [1], [0, 0, 1, 1], [], []>} : vector<64x8xbf16>, vector<8x8xbf16>, vector<64x8xf32> -> vector<64x8xf32>
    %63 = arith.addf %56, %62 : vector<64x8xf32>
    %c0_63 = arith.constant 0 : index
    %c0_64 = arith.constant 0 : index
    %64 = vector.load %arg3[%c0_63, %c0_64] : memref<1x8xf32, #tpu.memory_space<vmem>>, vector<1x8xf32>
    %65 = vector.broadcast %64 : vector<1x8xf32> to vector<64x8xf32>
    %66 = arith.mulf %63, %65 : vector<64x8xf32>
    %c0_65 = arith.constant 0 : index
    %c0_66 = arith.constant 0 : index
    %67 = vector.load %arg4[%c0_65, %c0_66] : memref<1x8xf32, #tpu.memory_space<vmem>>, vector<1x8xf32>
    %68 = vector.broadcast %67 : vector<1x8xf32> to vector<64x8xf32>
    %69 = arith.addf %66, %68 : vector<64x8xf32>
    %cst_67 = arith.constant 0.000000e+00 : f32
    %70 = vector.broadcast %cst_67 : f32 to vector<64x8xf32>
    %71 = arith.cmpf oge, %69, %70 : vector<64x8xf32>
    %cst_68 = arith.constant 2.000000e-01 : f32
    %72 = vector.broadcast %cst_68 : f32 to vector<64x8xf32>
    %73 = arith.mulf %72, %69 : vector<64x8xf32>
    %74 = arith.select %71, %69, %73 : vector<64x8xi1>, vector<64x8xf32>
    %75 = arith.truncf %74 : vector<64x8xf32> to vector<64x8xbf16>
    %c0_69 = arith.constant 0 : index
    %c0_70 = arith.constant 0 : index
    %76 = vector.load %arg5[%c0_69, %c0_70] : memref<64x8xbf16, #tpu.memory_space<vmem>>, vector<64x8xbf16>
    tpu.vector_store %arg5[%c0_69, %c0_70], %75 {strides = array<i32>} : memref<64x8xbf16, #tpu.memory_space<vmem>>, vector<64x8xbf16>,
    return
  }
  func.func @transform_0(%arg0: i32) -> (i32, i32, i32, i32) {
    %c0_i32 = arith.constant 0 : i32
    %c0_i32_0 = arith.constant 0 : i32
    %c0_i32_1 = arith.constant 0 : i32
    %c0_i32_2 = arith.constant 0 : i32
    return %arg0, %c0_i32, %c0_i32_0, %c0_i32_1 : i32, i32, i32, i32
  }
  func.func @transform_1(%arg0: i32) -> (i32, i32, i32) {
    %c0_i32 = arith.constant 0 : i32
    %c0_i32_0 = arith.constant 0 : i32
    %c0_i32_1 = arith.constant 0 : i32
    %c0_i32_2 = arith.constant 0 : i32
    return %c0_i32, %c0_i32_0, %c0_i32_1 : i32, i32, i32
  }
  func.func @transform_2(%arg0: i32) -> (i32, i32) {
    %c0_i32 = arith.constant 0 : i32
    %c0_i32_0 = arith.constant 0 : i32
    %c0_i32_1 = arith.constant 0 : i32
    return %c0_i32, %c0_i32_0 : i32, i32
  }
  func.func @transform_3(%arg0: i32) -> (i32, i32) {
    %c0_i32 = arith.constant 0 : i32
    %c0_i32_0 = arith.constant 0 : i32
    %c0_i32_1 = arith.constant 0 : i32
    return %c0_i32, %c0_i32_0 : i32, i32
  }
  func.func @transform_4(%arg0: i32) -> (i32, i32) {
    %c0_i32 = arith.constant 0 : i32
    %c0_i32_0 = arith.constant 0 : i32
    return %arg0, %c0_i32 : i32, i32
  }
}

module attributes {stable_mosaic.version = 11 : i64} {
  func.func @_heads_kernel(%arg0: i32, %arg1: memref<2x256xbf16, #tpu.memory_space<vmem>>, %arg2: memref<256x5xbf16, #tpu.memory_space<vmem>>, %arg3: memref<1x5xf32, #tpu.memory_space<vmem>>, %arg4: memref<2x5xf32, #tpu.memory_space<vmem>>) attributes {dimension_semantics = [#tpu.dimension_semantics<arbitrary>], iteration_bounds = array<i64: 1>, scalar_prefetch = 0 : i64, scratch_operands = 0 : i64, tpu.core_type = #tpu.core_type<tc>, window_params = [{pipeline_mode = #tpu.pipeline_mode<synchronous>, transform_indices = @transform_0, window_bounds = array<i64: 2, 256>}, {pipeline_mode = #tpu.pipeline_mode<synchronous>, transform_indices = @transform_1, window_bounds = array<i64: 256, 5>}, {pipeline_mode = #tpu.pipeline_mode<synchronous>, transform_indices = @transform_2, window_bounds = array<i64: 1, 5>}, {pipeline_mode = #tpu.pipeline_mode<synchronous>, transform_indices = @transform_3, window_bounds = array<i64: 2, 5>}]} {
    %c0 = arith.constant 0 : index
    %c0_0 = arith.constant 0 : index
    %0 = vector.load %arg1[%c0, %c0_0] : memref<2x256xbf16, #tpu.memory_space<vmem>>, vector<2x256xbf16>
    %c0_1 = arith.constant 0 : index
    %c0_2 = arith.constant 0 : index
    %1 = vector.load %arg2[%c0_1, %c0_2] : memref<256x5xbf16, #tpu.memory_space<vmem>>, vector<256x5xbf16>
    %cst = arith.constant dense<0.000000e+00> : vector<2x5xf32>
    %2 = tpu.matmul %0, %1, %cst {dimension_numbers = #tpu.dot_dimension_numbers<[1], [0], [0], [1], [0, 0, 1, 1], [], []>} : vector<2x256xbf16>, vector<256x5xbf16>, vector<2x5xf32> -> vector<2x5xf32>
    %c0_3 = arith.constant 0 : index
    %c0_4 = arith.constant 0 : index
    %3 = vector.load %arg3[%c0_3, %c0_4] : memref<1x5xf32, #tpu.memory_space<vmem>>, vector<1x5xf32>
    %4 = vector.broadcast %3 : vector<1x5xf32> to vector<2x5xf32>
    %5 = arith.addf %2, %4 : vector<2x5xf32>
    %c0_5 = arith.constant 0 : index
    %c0_6 = arith.constant 0 : index
    %6 = vector.load %arg4[%c0_5, %c0_6] : memref<2x5xf32, #tpu.memory_space<vmem>>, vector<2x5xf32>
    tpu.vector_store %arg4[%c0_5, %c0_6], %5 {strides = array<i32>} : memref<2x5xf32, #tpu.memory_space<vmem>>, vector<2x5xf32>,
    return
  }
  func.func @transform_0(%arg0: i32) -> (i32, i32) {
    %c0_i32 = arith.constant 0 : i32
    %c0_i32_0 = arith.constant 0 : i32
    %c0_i32_1 = arith.constant 0 : i32
    return %c0_i32, %c0_i32_0 : i32, i32
  }
  func.func @transform_1(%arg0: i32) -> (i32, i32) {
    %c0_i32 = arith.constant 0 : i32
    %c0_i32_0 = arith.constant 0 : i32
    %c0_i32_1 = arith.constant 0 : i32
    return %c0_i32, %c0_i32_0 : i32, i32
  }
  func.func @transform_2(%arg0: i32) -> (i32, i32) {
    %c0_i32 = arith.constant 0 : i32
    %c0_i32_0 = arith.constant 0 : i32
    %c0_i32_1 = arith.constant 0 : i32
    return %c0_i32, %c0_i32_0 : i32, i32
  }
  func.func @transform_3(%arg0: i32) -> (i32, i32) {
    %c0_i32 = arith.constant 0 : i32
    %c0_i32_0 = arith.constant 0 : i32
    %c0_i32_1 = arith.constant 0 : i32
    return %c0_i32, %c0_i32_0 : i32, i32
  }
}

</mosaic_0001>

<bundles_post_ra>
// kernel: _lambda_.7
= control target key start
LH: loop header
LB: loop body
LE: loop exit
PB: predicated region body
PF: predicated region fallthrough
CT: control target
= control target key end

     0   :  { %v279_v6 = vmov 1966171168   ;;  %v67_v8 = vlaneseq  ;;  %vm216_vm0 = vcmask 33792   ;;  %s357_s1 = inlined_call_operand.vmem [shape: bf16[256,5], index: 1, kind: input, shape index: {}]   ;;  %s358_s0 = inlined_call_operand.vmem [shape: bf16[2,256], index: 0, kind: input, shape index: {}]   ;;  %s359_s2 = inlined_call_operand.vmem [shape: f32[1,5], index: 2, kind: input, shape index: {}]   ;;  %s360_s3 = inlined_call_operand.vmem [shape: f32[2,5], index: 3, kind: output, shape index: {}]  }
   0x1   :  { %v263_v0 = vld [vmem:[%s357_s1 + $0x40] sm:$0xff]   ;;  %v265_v2 = vld [vmem:[%s357_s1 + $0x48] sm:$0xff]   ;;  %v267_v4 = vld [vmem:[%s357_s1 + $0x50] sm:$0xff]   ;;  %v65_v7 = vunpack.c.l.s4 %v279_v6 }
   0x2   :  { %v264_v1 = vld [vmem:[%s357_s1] sm:$0xff]   ;;  %240 = vmatprep.subr.bf16.mxu0 %v263_v0  ;;  %v266_v3 = vld [vmem:[%s357_s1 + $0x8] sm:$0xff]   ;;  %v268_v5 = vld [vmem:[%s357_s1 + $0x10] sm:$0xff]   ;;  %v68_v12 = vshrl.u32 %v67_v8, 7 }
   0x3   :  { %241 = vmatpush3.bf16.msra.mxu0 %v264_v1  ;;  %v269_v9 = vld [vmem:[%s357_s1 + $0x58] sm:$0xff]   ;;  %v66_v11 = vunpack.c.0.s8 %v65_v7  ;;  %v271_v13 = vld [vmem:[%s357_s1 + $0x60] sm:$0xff]   ;;  %v273_v16 = vld [vmem:[%s357_s1 + $0x68] sm:$0xff]  }
   0x4   :  { %242 = vmatprep.subr.bf16.mxu0 %v265_v2  ;;  %v270_v10 = vld [vmem:[%s357_s1 + $0x18] sm:$0xff]   ;;  %v272_v14 = vld [vmem:[%s357_s1 + $0x20] sm:$0xff]   ;;  %v274_v19 = vld [vmem:[%s357_s1 + $0x28] sm:$0xff]  }
   0x5   :  { %v69_v15 = vsub.s32 %v66_v11, %v68_v12  ;;  %v223_v17 = vld.sshfl [vmem:[%s358_s0] sm:$0x11 pattern:$0x75316420]  ;;  %v275_v21 = vld [vmem:[%s357_s1 + $0x70] sm:$0xff]   ;;  %v277_v23 = vld [vmem:[%s357_s1 + $0x78] sm:$0xff]  }
   0x6   :  { %v63_v18 = vcombine.high %v223_v17, %v223_v17  ;;  %v276_v22 = vld [vmem:[%s357_s1 + $0x30] sm:$0xff]   ;;  %v278_v24 = vld [vmem:[%s357_s1 + $0x38] sm:$0xff]   ;;  %v222_v27 = vld [vmem:[%s359_s2] ss:$0 sm:$0xff] }
   0x7   :  { %243 = vmatpush3.bf16.msra.mxu0 %v266_v3  ;;  %v70_v25 = vrot.slane %v223_v17, %v69_v15 }
   0x8   :  { %244 = vmatprep.subr.bf16.mxu0 %v267_v4  ;;  %v77_v20 = vrot.slane %v63_v18, %v69_v15 }
   0xa   :  { %208 = vmatprep.mubr.bf16.mxu0 %v77_v20 }
   0xb   :  { %245 = vmatpush3.bf16.msra.mxu0 %v268_v5 }
   0xc   :  { %246 = vmatprep.subr.bf16.mxu0 %v269_v9 }
   0xf   :  { %247 = vmatpush3.bf16.msra.mxu0 %v270_v10 }
  0x10   :  { %248 = vmatprep.subr.bf16.mxu0 %v271_v13 }
  0x13   :  { %249 = vmatpush3.bf16.msra.mxu0 %v272_v14 }
  0x14   :  { %250 = vmatprep.subr.bf16.mxu0 %v273_v16 }
  0x17   :  { %251 = vmatpush3.bf16.msra.mxu0 %v274_v19 }
  0x18   :  { %252 = vmatprep.subr.bf16.mxu0 %v275_v21 }
  0x1b   :  { %253 = vmatpush3.bf16.msra.mxu0 %v276_v22 }
  0x1c   :  { %254 = vmatprep.subr.bf16.mxu0 %v277_v23 }
  0x1f   :  { %255 = vmatpush3.bf16.msra.mxu0 %v278_v24 }
  0x22   :  { %209 = vmatmul.mubr.bf16.vlgmr.msra.gmra.mrb[0].mxu0 %v70_v25 }
  0xf5   :  { %v256_v26 = vpop.f32.mrb[0].mxu0 }
  0xf6   :  { %v257_v28 = vpop.f32.mrb[1].mxu0 }
  0xf7   :  { %v258_v29 = vadd.f32 %v257_v28, %v256_v26  ;;  %v259_v30 = vpop.f32.mrb[2].mxu0 }
  0xf8   :  { %v260_v31 = vpop.f32.mrb[3].mxu0 }
  0xf9   :  { %v211_v32 = vadd.f32 %v258_v29, %v222_v27 }
  0xfb   :  { %217 = vst.msk [vmem:[%s360_s3] sm:$0x3] %vm216_vm0, %v211_v32 }

// kernel: _lambda_.4
= control target key start
LH: loop header
LB: loop body
LE: loop exit
PB: predicated region body
PF: predicated region fallthrough
CT: control target
= control target key end

     0   :  { %s1179_s9 = smov 0   ;;  %s1367_s0 = inlined_call_operand.vmem [shape: bf16[2,9,9,16], index: 0, kind: input, shape index: {}]   ;;  %s1368_s1 = inlined_call_operand.vmem [shape: bf16[4,16,8], index: 1, kind: input, shape index: {}]   ;;  %s1369_s2 = inlined_call_operand.vmem [shape: bf16[128,8], index: 2, kind: output, shape index: {}]  }
   0x1 LB: > { %s1185_s10 = sadd.s32 4294967295, %s1162_s9   ;;  %p963_p0 = scmp.ge.s32.totalorder %s1162_s9, 1  ;;  %s1162_s9 = sphi %s1179_s9, %s12_s9  }
   0x2   : > { %p112_p1 = scmp.lt.s32.totalorder %s1162_s9, 3 }
   0x4   : > { %p113_p2 = pnand %p963_p0, %p112_p1 }
   0x5   : > { %v1144_v0 = vld [vmem:[%s1368_s1 + $0x10] sm:$0xff] (!%p113_p2)   ;;  %p134_p3 = scmp.lt.s32.totalorder (!%p113_p2), %s1185_s10, 1  ;;  %v1147_v1 = vld [vmem:[%s1368_s1 + $0x8] sm:$0xff] (!%p113_p2)   ;;  %v1200_v2 = vld [vmem:[%s1368_s1] sm:$0xff] (!%p113_p2)   ;;  %vm300_vm0 = vcmask (!%p113_p2), 130048   ;;  %s965_s24 = sshll.u32 (!%p113_p2), %s1185_s10, 3 }
   0x6   : > { %116 = sbr.rel (%p113_p2) target bundleno = 296 (0x128), region = 28  ;;  %1091 = vmatprep.subr.bf16.mxu0 (!%p113_p2), %v1144_v0  ;;  %1071 = vmatprep.subr.bf16.mxu1 (!%p113_p2), %v1147_v1  ;;  %v1151_v3 = vld [vmem:[%s1368_s1 + $0x18] sm:$0xff] (!%p113_p2)   ;;  %vm164_vm1 = vsmask.f32 (!%p113_p2), 3328  ;;  %vm165_vm2 = vsmask.f32 (!%p113_p2), 7440 }
   0x7   : > { %1092 = vmatpush3.bf16.msra.mxu0 (!%p113_p2), %v1144_v0  ;;  %1072 = vmatpush3.bf16.msra.mxu1 (!%p113_p2), %v1147_v1  ;;  %vm1242_vm3 = vmor (!%p113_p2), %vm164_vm1, %vm165_vm2  ;;  %p140_p4 = scmp.lt.s32.totalorder (!%p113_p2), %s965_s24, 15  ;;  %vm894_vm6 = vcmask (!%p113_p2), 60416  }
   0x8   : > { %1081 = vmatprep.subr.bf16.mxu1 (!%p113_p2), %v1200_v2  ;;  %1101 = vmatprep.subr.bf16.mxu0 (!%p113_p2), %v1151_v3 }
   0xd   : > { %s135_s15 = scalar_select %p134_p3, %s1185_s10, 1 }
   0xe   : > { %s1373_s24 = smov (!%p140_p4, %s965_s24), 15 }
   0xf   : > { %s1135_s18 = smul.u32 72, %s135_s15  ;;  %s966_s25 = sshll.u32 %s1373_s24, 2 }
  0x10   : > { %s1346_s28 = scalar_lea.vmem %s1369_s2, %s966_s25 }
  0x11   : > { %s1209_s23 = scalar_lea.vmem %s1367_s0, %s1135_s18 }
  0x12   : > { %v1145_v4 = vld [vmem:[%s1209_s23 + $0x8] ss:$8 sps:$4 sm:$0xff]   ;;  %v1146_v5 = vld [vmem:[%s1209_s23 + $0x18] ss:$8 sps:$4 sm:$0xff]   ;;  %v156_v9 = vld [vmem:[%s1209_s23 + $0x4] sm:$0x1] }
  0x13   : > { %1093 = vmatprep.mubr.msk.bf16.mxu0 %vm300_vm0, %v1145_v4  ;;  %v1148_v6 = vld [vmem:[%s1209_s23 + $0x28] ss:$8 sps:$4 sm:$0xff]   ;;  %v1217_v7 = vld [vmem:[%s1209_s23] sm:$0xf]  ;;  %v157_v10 = vld [vmem:[%s1209_s23 + $0xc] sm:$0x1] }
  0x14   : > { %1094 = vmatmul.mubr.msk.bf16.vlgmr.msra.gmra.mrb[0].mxu0 %vm300_vm0, %v1146_v5  ;;  %v1220_v8 = vld [vmem:[%s1209_s23 + $0x8] sm:$0xf]  ;;  %v168_v11 = vshrl.u32 %v1217_v7, 16  ;;  %v171_v12 = vshll.u32 %v1217_v7, 16  ;;  %v177_v13 = vshll.u32 %v156_v9, 16  ;;  %v191_v16 = vshll.u32 %v157_v10, 16 }
  0x15   : > { %1097 = vmatprep.mubr.msk.bf16.mxu0 %vm300_vm0, %v1148_v6  ;;  %v182_v14 = vshrl.u32 %v1220_v8, 16  ;;  %1102 = vmatpush3.bf16.msra.mxu0 %v1151_v3  ;;  %v185_v15 = vshll.u32 %v1220_v8, 16  ;;  %v1150_v21 = vld [vmem:[%s1209_s23 + $0x38] ss:$8 sps:$4 sm:$0xff]   ;;  %v1231_v24 = vld [vmem:[%s1209_s23 + $0x10] sm:$0xf] }
  0x16   : > { %v170_v17 = vrot.slane %v168_v11, 4  ;;  %v173_v18 = vrot.slane %v171_v12, 5  ;;  %v179_v19 = vrot.slane %v177_v13, 5  ;;  %v193_v23 = vrot.slane %v191_v16, 5  ;;  %v1234_v25 = vld [vmem:[%s1209_s23 + $0x18] sm:$0xf] }
  0x17   : > { %v184_v20 = vrot.slane %v182_v14, 4  ;;  %v187_v22 = vrot.slane %v185_v15, 5  ;;  %v158_v27 = vld [vmem:[%s1209_s23 + $0x14] sm:$0x1]  ;;  %v159_v28 = vld [vmem:[%s1209_s23 + $0x1c] sm:$0x1] }
  0x18   : > { %v174_v26 = vor.u32 %v173_v18, %v170_v17  ;;  %v196_v29 = vshrl.u32 %v1231_v24, 16  ;;  %v199_v30 = vshll.u32 %v1231_v24, 16  ;;  %v205_v33 = vshll.u32 %v158_v27, 16  ;;  %v1006_v36 = vld [vmem:[%s1209_s23 + $0x8] sm:$0xf] }
  0x19   : > { %v188_v32 = vor.u32 %v187_v22, %v184_v20  ;;  %v210_v34 = vshrl.u32 %v1234_v25, 16  ;;  %v213_v35 = vshll.u32 %v1234_v25, 16  ;;  %v219_v40 = vshll.u32 %v159_v28, 16  ;;  %v1007_v41 = vld [vmem:[%s1209_s23 + $0xc] sm:$0x1] }
  0x1a   : > { %v175_v37 = vrot.slane %v174_v26, 4  ;;  %v198_v38 = vrot.slane %v196_v29, 4  ;;  %v201_v39 = vrot.slane %v199_v30, 5  ;;  %v207_v43 = vrot.slane %v205_v33, 5  ;;  %v1008_v46 = vld [vmem:[%s1209_s23 + $0x10] sm:$0xf] }
  0x1b   : > { %v189_v42 = vrot.slane %v188_v32, 4  ;;  %v212_v44 = vrot.slane %v210_v34, 4  ;;  %v215_v45 = vrot.slane %v213_v35, 5  ;;  %v221_v49 = vrot.slane %v219_v40, 5  ;;  %v1009_v53 = vld [vmem:[%s1209_s23 + $0x14] sm:$0x1] }
  0x1c   : > { %1098 = vmatmul.mubr.msk.bf16.gmra.mrb[4].mxu0 %vm300_vm0, %v1150_v21  ;;  %v180_v47 = vsel %vm1242_vm3, %v175_v37, %v179_v19  ;;  %v202_v48 = vor.u32 %v201_v39, %v198_v38  ;;  %v621_v50 = vshrl.u32 %v1006_v36, 16  ;;  %v624_v54 = vshll.u32 %v1006_v36, 16  ;;  %v1258_v56 = vld [vmem:[%s1209_s23 + $0x20] sm:$0xf]  ;;  %v160_v1 = vld [vmem:[%s1209_s23 + $0x24] sm:$0x1] }
  0x1d   : > { %v194_v51 = vsel %vm1242_vm3, %v189_v42, %v193_v23  ;;  %v216_v52 = vor.u32 %v215_v45, %v212_v44  ;;  %v630_v55 = vshll.u32 %v1007_v41, 16  ;;  %v635_v60 = vshrl.u32 %v1008_v46, 16  ;;  %v1265_v6 = vld [vmem:[%s1209_s23 + $0x28] sm:$0xf]  ;;  %v161_v13 = vld [vmem:[%s1209_s23 + $0x2c] sm:$0x1] }
  0x1e   : > { %v969_v57 = vcombine.low %v180_v47, %v194_v51  ;;  %v203_v58 = vrot.slane %v202_v48, 4  ;;  %v623_v59 = vrot.slane %v621_v50, 4  ;;  %v626_v62 = vrot.slane %v624_v54, 5  ;;  %v1010_v15 = vld [vmem:[%s1209_s23 + $0x18] sm:$0xf] }
  0x1f   : > { %v217_v61 = vrot.slane %v216_v52, 4  ;;  %v632_v63 = vrot.slane %v630_v55, 5  ;;  %v638_v0 = vshll.u32 %v1008_v46, 16  ;;  %v637_v4 = vrot.slane %v635_v60, 4  ;;  %v1011_v26 = vld [vmem:[%s1209_s23 + $0x1c] sm:$0x1] }
  0x20   : > { %1073 = vmatprep.mubr.msk.bf16.mxu1 %vm300_vm0, %v969_v57  ;;  %v208_v3 = vsel %vm1242_vm3, %v203_v58, %v207_v43  ;;  %v644_v5 = vshll.u32 %v1009_v53, 16  ;;  %v224_v9 = vshrl.u32 %v1258_v56, 16  ;;  %v627_v11 = vor.u32 %v626_v62, %v623_v59  ;;  %v1012_v30 = vld [vmem:[%s1209_s23 + $0x20] sm:$0xf]  ;;  %v1013_v39 = vld [vmem:[%s1209_s23 + $0x24] sm:$0x1] }
  0x21   : > { %v222_v10 = vsel %vm1242_vm3, %v217_v61, %v221_v49  ;;  %v640_v12 = vrot.slane %v638_v0, 5  ;;  %v227_v14 = vshll.u32 %v1258_v56, 16  ;;  %v233_v19 = vshll.u32 %v160_v1, 16  ;;  %v1288_v50 = vld [vmem:[%s1209_s23 + $0x38] sm:$0xf] }
  0x22   : > { %v970_v16 = vcombine.low %v208_v3, %v222_v10  ;;  %v646_v17 = vrot.slane %v644_v5, 5  ;;  %v226_v18 = vrot.slane %v224_v9, 4  ;;  %v628_v20 = vrot.slane %v627_v11, 4  ;;  %v162_v51 = vld [vmem:[%s1209_s23 + $0x34] sm:$0x1] }
  0x23   : > { %v641_v21 = vor.u32 %v640_v12, %v637_v4  ;;  %v229_v22 = vrot.slane %v227_v14, 5  ;;  %v238_v23 = vshrl.u32 %v1265_v6, 16  ;;  %v235_v27 = vrot.slane %v233_v19, 5  ;;  %v163_v62 = vld [vmem:[%s1209_s23 + $0x3c] sm:$0x1] }
  0x24   : > { %1074 = vmatmul.mubr.msk.bf16.vlgmr.msra.gmra.mrb[0].mxu1 %vm300_vm0, %v970_v16  ;;  %v241_v28 = vshll.u32 %v1265_v6, 16  ;;  %v247_v29 = vshll.u32 %v161_v13, 16  ;;  %v649_v32 = vshrl.u32 %v1010_v15, 16  ;;  %v633_v33 = vsel %vm1242_vm3, %v628_v20, %v632_v63  ;;  %v1014_v10 = vld [vmem:[%s1209_s23 + $0x28] sm:$0xf] }
  0x25   : > { %1082 = vmatpush3.bf16.msra.mxu1 %v1200_v2  ;;  %v642_v34 = vrot.slane %v641_v21, 4  ;;  %v230_v35 = vor.u32 %v229_v22, %v226_v18  ;;  %v240_v36 = vrot.slane %v238_v23, 4  ;;  %v652_v41 = vshll.u32 %v1010_v15, 16  ;;  %v1285_v2 = vld [vmem:[%s1209_s23 + $0x30] sm:$0xf] }
  0x26   : > { %v243_v37 = vrot.slane %v241_v28, 5  ;;  %v249_v38 = vrot.slane %v247_v29, 5  ;;  %v651_v40 = vrot.slane %v649_v32, 4  ;;  %v658_v44 = vshll.u32 %v1011_v26, 16  ;;  %v1015_v11 = vld [vmem:[%s1209_s23 + $0x2c] sm:$0x1] }
  0x27   : > { %v647_v42 = vsel %vm1242_vm3, %v642_v34, %v646_v17  ;;  %v231_v43 = vrot.slane %v230_v35, 4  ;;  %v663_v45 = vshrl.u32 %v1012_v30, 16  ;;  %v654_v48 = vrot.slane %v652_v41, 5  ;;  %v1016_v15 = vld [vmem:[%s1209_s23 + $0x30] sm:$0xf] }
  0x28   : > { %v1024_v46 = vcombine.low %v633_v33, %v647_v42  ;;  %v244_v47 = vor.u32 %v243_v37, %v240_v36  ;;  %v666_v49 = vshll.u32 %v1012_v30, 16  ;;  %v660_v53 = vrot.slane %v658_v44, 5  ;;  %v1017_v22 = vld [vmem:[%s1209_s23 + $0x34] sm:$0x1]  ;;  %v1018_v30 = vld [vmem:[%s1209_s23 + $0x38] sm:$0xf] }
  0x29   : > { %v236_v52 = vsel %vm1242_vm3, %v231_v43, %v235_v27  ;;  %v665_v54 = vrot.slane %v663_v45, 4  ;;  %v672_v55 = vshll.u32 %v1013_v39, 16  ;;  %v655_v58 = vor.u32 %v654_v48, %v651_v40  ;;  %v1019_v36 = vld [vmem:[%s1209_s23 + $0x3c] sm:$0x1]  ;;  %v1020_v41 = vld [vmem:[%s1209_s23 + $0x40] sm:$0xf] }
  0x2a   : > { %1103 = vmatprep.mubr.msk.bf16.mxu0 %vm300_vm0, %v1024_v46  ;;  %v245_v57 = vrot.slane %v244_v47, 4  ;;  %v668_v59 = vrot.slane %v666_v49, 5  ;;  %v252_v60 = vshrl.u32 %v1285_v2, 16  ;;  %v255_v63 = vshll.u32 %v1285_v2, 16 }
  0x2b   : > { %v674_v61 = vrot.slane %v672_v55, 5  ;;  %v261_v0 = vshll.u32 %v162_v51, 16  ;;  %v266_v1 = vshrl.u32 %v1288_v50, 16  ;;  %v656_v4 = vrot.slane %v655_v58, 4 }
  0x2c   : > { %v250_v3 = vsel %vm1242_vm3, %v245_v57, %v249_v38  ;;  %v669_v5 = vor.u32 %v668_v59, %v665_v54  ;;  %v254_v9 = vrot.slane %v252_v60, 4  ;;  %v257_v13 = vrot.slane %v255_v63, 5 }
  0x2d   : > { %v971_v12 = vcombine.low %v236_v52, %v250_v3  ;;  %v268_v14 = vrot.slane %v266_v1, 4  ;;  %v978_v16 = vcombine.low %v1217_v7, %v1220_v8  ;;  %v661_v17 = vsel %vm1242_vm3, %v656_v4, %v660_v53  ;;  %v1021_v52 = vld [vmem:[%s1209_s23 + $0x44] sm:$0x1] }
  0x2e   : > { %v670_v18 = vrot.slane %v669_v5, 4  ;;  %v269_v19 = vshll.u32 %v1288_v50, 16  ;;  %v275_v20 = vshll.u32 %v163_v62, 16  ;;  %v258_v21 = vor.u32 %v257_v13, %v254_v9 }
  0x2f   : > { %1077 = vmatprep.mubr.msk.bf16.mxu1 %vm300_vm0, %v971_v12  ;;  %v677_v23 = vshrl.u32 %v1014_v10, 16  ;;  %v680_v26 = vshll.u32 %v1014_v10, 16  ;;  %v686_v27 = vshll.u32 %v1015_v11, 16  ;;  %v263_v7 = vrot.slane %v261_v0, 5 }
  0x30   : > { %v675_v28 = vsel %vm1242_vm3, %v670_v18, %v674_v61  ;;  %v271_v8 = vrot.slane %v269_v19, 5  ;;  %v691_v29 = vshrl.u32 %v1016_v15, 16  ;;  %v259_v33 = vrot.slane %v258_v21, 4 }
  0x31   : > { %v1025_v32 = vcombine.low %v661_v17, %v675_v28  ;;  %v679_v34 = vrot.slane %v677_v23, 4  ;;  %v682_v35 = vrot.slane %v680_v26, 5  ;;  %v277_v38 = vrot.slane %v275_v20, 5 }
  0x32   : > { %v272_v37 = vor.u32 %v271_v8, %v268_v14  ;;  %v693_v39 = vrot.slane %v691_v29, 4  ;;  %v694_v40 = vshll.u32 %v1016_v15, 16  ;;  %v688_v43 = vrot.slane %v686_v27, 5 }
  0x33   : > { %1104 = vmatmul.mubr.msk.bf16.vlgmr.msra.gmra.mrb[0].mxu0 %vm300_vm0, %v1025_v32  ;;  %v683_v42 = vor.u32 %v682_v35, %v679_v34  ;;  %v700_v44 = vshll.u32 %v1017_v22, 16  ;;  %v705_v45 = vshrl.u32 %v1018_v30, 16  ;;  %v264_v46 = vsel %vm1242_vm3, %v259_v33, %v263_v7 }
  0x34   : > { %v273_v47 = vrot.slane %v272_v37, 4  ;;  %v696_v48 = vrot.slane %v694_v40, 5  ;;  %v708_v49 = vshll.u32 %v1018_v30, 16  ;;  %v714_v54 = vshll.u32 %v1019_v36, 16 }
  0x35   : > { %v684_v51 = vrot.slane %v683_v42, 4  ;;  %v707_v53 = vrot.slane %v705_v45, 4  ;;  %v719_v55 = vshrl.u32 %v1020_v41, 16  ;;  %v702_v59 = vrot.slane %v700_v44, 5 }
  0x36   : > { %v278_v57 = vsel %vm1242_vm3, %v273_v47, %v277_v38  ;;  %v697_v58 = vor.u32 %v696_v48, %v693_v39  ;;  %v710_v60 = vrot.slane %v708_v49, 5  ;;  %v722_v63 = vshll.u32 %v1020_v41, 16 }
  0x37   : > { %v972_v61 = vcombine.low %v264_v46, %v278_v57  ;;  %v721_v62 = vrot.slane %v719_v55, 4  ;;  %v689_v0 = vsel %vm1242_vm3, %v684_v51, %v688_v43  ;;  %v728_v4 = vshll.u32 %v1021_v52, 16 }
  0x38   : > { %v698_v1 = vrot.slane %v697_v58, 4  ;;  %v711_v3 = vor.u32 %v710_v60, %v707_v53  ;;  %v716_v5 = vrot.slane %v714_v54, 5  ;;  %v724_v9 = vrot.slane %v722_v63, 5 }
  0x39   : > { %1078 = vmatmul.mubr.msk.bf16.gmra.mrb[4].mxu1 %vm300_vm0, %v972_v61  ;;  %v730_v14 = vrot.slane %v728_v4, 5  ;;  %v979_v18 = vcombine.low %v1231_v24, %v1234_v25  ;;  %v980_v19 = vcombine.low %v1258_v56, %v1265_v6  ;;  %v981_v21 = vcombine.low %v1285_v2, %v1288_v50 }
  0x3a   : > { %v703_v10 = vsel %vm1242_vm3, %v698_v1, %v702_v59  ;;  %1083 = vmatprep.mubr.msk.bf16.mxu1 %vm300_vm0, %v978_v16  ;;  %v712_v11 = vrot.slane %v711_v3, 4  ;;  %v725_v13 = vor.u32 %v724_v9, %v721_v62 }
  0x3b   : > { %v1026_v12 = vcombine.low %v689_v0, %v703_v10 }
  0x3c   : > { %v717_v15 = vsel %vm1242_vm3, %v712_v11, %v716_v5  ;;  %v726_v17 = vrot.slane %v725_v13, 4 }
  0x3d   : > { %1107 = vmatprep.mubr.msk.bf16.mxu0 %vm300_vm0, %v1026_v12 }
  0x3e   : > { %v731_v16 = vsel %vm1242_vm3, %v726_v17, %v730_v14 }
  0x3f   : > { %v1027_v20 = vcombine.low %v717_v15, %v731_v16 }
  0x41   : > { %1084 = vmatmul.mubr.msk.bf16.vlgmr.msra.gmra.mrb[0].mxu1 %vm300_vm0, %v979_v18  ;;  %1108 = vmatmul.mubr.msk.bf16.gmra.mrb[4].mxu0 %vm300_vm0, %v1027_v20 }
  0x42   : > { %1087 = vmatprep.mubr.msk.bf16.mxu1 %vm300_vm0, %v980_v19 }
  0x49   : > { %1088 = vmatmul.mubr.msk.bf16.gmra.mrb[4].mxu1 %vm300_vm0, %v981_v21 }
 0x106   : > { %v1105_v22 = vpop.f32.mrb[0].mxu0 }
 0x107   : > { %v799_v24 = vpop.f32.mrb[1].mxu0 }
 0x108   : > { %v1106_v25 = vpop.f32.mrb[2].mxu0 }
 0x109   : > { %v802_v23 = vpop.f32.mrb[3].mxu0 }
 0x114   : > { %v1085_v31 = vpop.f32.mrb[0].mxu1  ;;  %v1109_v56 = vpop.f32.mrb[4].mxu0 }
 0x115   : > { %v1111_v6 = vadd.f32 %v1105_v22, %v1085_v31  ;;  %v450_v26 = vpop.f32.mrb[1].mxu1  ;;  %v815_v27 = vpop.f32.mrb[5].mxu0 }
 0x116   : > { %v1112_v28 = vadd.f32 %v799_v24, %v450_v26  ;;  %v1086_v7 = vpop.f32.mrb[2].mxu1  ;;  %v1110_v2 = vpop.f32.mrb[6].mxu0 }
 0x117   : > { %vm840_vm4 = vcmp.ge.f32.partialorder %v1111_v6, 0.0  ;;  %v848_v8 = vmul.f32 0.2, %v1111_v6  ;;  %v1113_v50 = vadd.f32 %v1106_v25, %v1086_v7  ;;  %v453_v29 = vpop.f32.mrb[3].mxu1  ;;  %v818_v32 = vpop.f32.mrb[7].mxu0 }
 0x118   : > { %vm838_vm5 = vcmp.ge.f32.partialorder %v1112_v28, 0.0  ;;  %v846_v30 = vmul.f32 0.2, %v1112_v28  ;;  %v1114_v33 = vadd.f32 %v802_v23, %v453_v29 }
 0x119   : > { %v856_v34 = vsel %vm840_vm4, %v1111_v6, %v848_v8  ;;  %vm841_vm7 = vcmp.ge.f32.partialorder %v1113_v50, 0.0  ;;  %v849_v35 = vmul.f32 0.2, %v1113_v50 }
 0x11a   : > { %v1045_v36 = vpack.c.bf16 %v856_v34, %v856_v34  ;;  %v854_v37 = vsel %vm838_vm5, %v1112_v28, %v846_v30  ;;  %vm839_vm8 = vcmp.ge.f32.partialorder %v1114_v33, 0.0  ;;  %v847_v38 = vmul.f32 0.2, %v1114_v33 }
 0x11b   : > { %v1043_v39 = vpack.c.bf16 %v854_v37, %v854_v37  ;;  %v857_v40 = vsel %vm841_vm7, %v1113_v50, %v849_v35 }
 0x11c   : > { %897 = vst.msk [vmem:[%s1346_s28 + $0x8] sm:$0xf] %vm894_vm6, %v1045_v36  ;;  %v1046_v41 = vpack.c.bf16 %v857_v40, %v857_v40  ;;  %v855_v42 = vsel %vm839_vm8, %v1114_v33, %v847_v38  ;;  %v1089_v43 = vpop.f32.mrb[4].mxu1 }
 0x11d   : > { %895 = vst.msk [vmem:[%s1346_s28] sm:$0xf] %vm894_vm6, %v1043_v39  ;;  %v1044_v44 = vpack.c.bf16 %v855_v42, %v855_v42  ;;  %v1115_v45 = vadd.f32 %v1109_v56, %v1089_v43  ;;  %v466_v46 = vpop.f32.mrb[5].mxu1 }
 0x11e   : > { %898 = vst.msk [vmem:[%s1346_s28 + $0xc] sm:$0xf] %vm894_vm6, %v1046_v41  ;;  %v1116_v47 = vadd.f32 %v815_v27, %v466_v46  ;;  %v1090_v48 = vpop.f32.mrb[6].mxu1 }
 0x11f   : > { %896 = vst.msk [vmem:[%s1346_s28 + $0x4] sm:$0xf] %vm894_vm6, %v1044_v44  ;;  %vm844_vm9 = vcmp.ge.f32.partialorder %v1115_v45, 0.0  ;;  %v852_v49 = vmul.f32 0.2, %v1115_v45  ;;  %v1117_v51 = vadd.f32 %v1110_v2, %v1090_v48  ;;  %v469_v52 = vpop.f32.mrb[7].mxu1 }
 0x120   : > { %vm842_vm10 = vcmp.ge.f32.partialorder %v1116_v47, 0.0  ;;  %v850_v53 = vmul.f32 0.2, %v1116_v47  ;;  %v1118_v54 = vadd.f32 %v818_v32, %v469_v52 }
 0x121   : > { %v860_v55 = vsel %vm844_vm9, %v1115_v45, %v852_v49  ;;  %vm845_vm11 = vcmp.ge.f32.partialorder %v1117_v51, 0.0  ;;  %v853_v57 = vmul.f32 0.2, %v1117_v51 }
 0x122   : > { %v1049_v58 = vpack.c.bf16 %v860_v55, %v860_v55  ;;  %v858_v59 = vsel %vm842_vm10, %v1116_v47, %v850_v53  ;;  %vm843_vm12 = vcmp.ge.f32.partialorder %v1118_v54, 0.0  ;;  %v851_v60 = vmul.f32 0.2, %v1118_v54 }
 0x123   : > { %v1047_v61 = vpack.c.bf16 %v858_v59, %v858_v59  ;;  %v861_v62 = vsel %vm845_vm11, %v1117_v51, %v853_v57 }
 0x124   : > { %901 = vst.msk [vmem:[%s1346_s28 + $0x18] sm:$0xf] %vm894_vm6, %v1049_v58  ;;  %v1050_v63 = vpack.c.bf16 %v861_v62, %v861_v62  ;;  %v859_v0 = vsel %vm843_vm12, %v1118_v54, %v851_v60 }
 0x125   : > { %899 = vst.msk [vmem:[%s1346_s28 + $0x10] sm:$0xf] %vm894_vm6, %v1047_v61  ;;  %v1048_v1 = vpack.c.bf16 %v859_v0, %v859_v0 }
 0x126   : > { %902 = vst.msk [vmem:[%s1346_s28 + $0x1c] sm:$0xf] %vm894_vm6, %v1050_v63 }
 0x127   : > { %900 = vst.msk [vmem:[%s1346_s28 + $0x14] sm:$0xf] %vm894_vm6, %v1048_v1 }
 0x128 PF: > { %s12_s9 = sadd.s32 1, %s1162_s9  }
 0x129   : > { %p9_p5 = scmp.ge.s32.totalorder %s12_s9, 4  }
 0x12b   :  { %11 = sbr.rel (!%p9_p5) target bundleno = 1 (0x1), region = 62 }

// kernel: _lambda_.6
= control target key start
LH: loop header
LB: loop body
LE: loop exit
PB: predicated region body
PF: predicated region fallthrough
CT: control target
= control target key end

     0   :  { %s957_s15 = smov 0   ;;  %s1086_s0 = inlined_call_operand.vmem [shape: bf16[2,5,9,32], index: 0, kind: input, shape index: {}]   ;;  %s1087_s1 = inlined_call_operand.vmem [shape: bf16[4,32,16], index: 1, kind: input, shape index: {}]   ;;  %s1088_s2 = inlined_call_operand.vmem [shape: f32[1,16], index: 2, kind: input, shape index: {}]   ;;  %s1089_s3 = inlined_call_operand.vmem [shape: f32[1,16], index: 3, kind: input, shape index: {}]   ;;  %s1090_s4 = inlined_call_operand.vmem [shape: bf16[64,16], index: 4, kind: output, shape index: {}]  }
   0x1 LB: > { %s963_s16 = sadd.s32 4294967295, %s930_s15   ;;  %p779_p0 = scmp.ge.s32.totalorder %s930_s15, 1  ;;  %s930_s15 = sphi %s957_s15, %s14_s15  }
   0x2   : > { %p162_p1 = scmp.lt.s32.totalorder %s930_s15, 3 }
   0x4   : > { %p163_p2 = pnand %p779_p0, %p162_p1 }
   0x5   : > { %v912_v0 = vld [vmem:[%s1087_s1 + $0x20] sm:$0xff] (!%p163_p2)   ;;  %p188_p3 = scmp.lt.s32.totalorder (!%p163_p2), %s963_s16, 1  ;;  %v913_v1 = vld [vmem:[%s1087_s1 + $0x28] sm:$0xff] (!%p163_p2)   ;;  %v915_v2 = vld [vmem:[%s1087_s1 + $0x10] sm:$0xff] (!%p163_p2)   ;;  %vm212_vm0 = vsmask.f32 (!%p163_p2), 3328 }
   0x6   : > { %166 = sbr.rel (%p163_p2) target bundleno = 274 (0x112), region = 36  ;;  %875 = vmatprep.subr.bf16.mxu0 (!%p163_p2), %v912_v0  ;;  %v917_v3 = vld [vmem:[%s1087_s1 + $0x18] sm:$0xff] (!%p163_p2)   ;;  %859 = vmatprep.subr.bf16.mxu1 (!%p163_p2), %v915_v2  ;;  %v918_v4 = vld [vmem:[%s1087_s1 + $0x30] sm:$0xff] (!%p163_p2)   ;;  %vm294_vm1 = vcmask (!%p163_p2), 261120   ;;  %vm213_vm2 = vsmask.f32 (!%p163_p2), 7440 }
   0x7   : > { %876 = vmatpush3.bf16.msra.mxu0 (!%p163_p2), %v912_v0  ;;  %860 = vmatpush3.bf16.msra.mxu1 (!%p163_p2), %v915_v2  ;;  %v992_v5 = vld [vmem:[%s1087_s1] sm:$0xff] (!%p163_p2)   ;;  %v920_v22 = vld [vmem:[%s1087_s1 + $0x38] sm:$0xff] (!%p163_p2)   ;;  %vm1028_vm3 = vmor (!%p163_p2), %vm212_vm0, %vm213_vm2  ;;  %s781_s12 = sshll.u32 (!%p163_p2), %s963_s16, 2  ;;  %vm714_vm7 = vcmask (!%p163_p2), 125952  }
   0x8   : > { %877 = vmatprep.subr.bf16.mxu0 (!%p163_p2), %v913_v1  ;;  %861 = vmatprep.subr.bf16.mxu1 (!%p163_p2), %v917_v3  ;;  %p194_p4 = scmp.lt.s32.totalorder (!%p163_p2), %s781_s12, 7 }
   0xb   : > { %878 = vmatpush3.bf16.msra.mxu0 (!%p163_p2), %v913_v1  ;;  %862 = vmatpush3.bf16.msra.mxu1 (!%p163_p2), %v917_v3 }
   0xc   : > { %883 = vmatprep.subr.bf16.mxu0 (!%p163_p2), %v918_v4  ;;  %867 = vmatprep.subr.bf16.mxu1 (!%p163_p2), %v992_v5 }
   0xd   : > { %s189_s21 = scalar_select %p188_p3, %s963_s16, 1 }
   0xe   : > { %s1094_s12 = smov (!%p194_p4, %s781_s12), 7 }
   0xf   : > { %s903_s26 = smul.u32 40, %s189_s21  ;;  %s782_s16 = sshll.u32 %s1094_s12, 2 }
  0x10   : > { %s197_s21 = scalar_lea.vmem %s1090_s4, %s782_s16 }
  0x11   : > { %s987_s5 = scalar_lea.vmem %s1086_s0, %s903_s26 }
  0x12   : > { %v914_v6 = vld [vmem:[%s987_s5 + $0x8] ss:$8 sps:$4 sm:$0xff]   ;;  %v916_v7 = vld [vmem:[%s987_s5 + $0x18] ss:$8 sps:$4 sm:$0xff]   ;;  %v208_v10 = vld [vmem:[%s987_s5 + $0x4] sm:$0x1] }
  0x13   : > { %879 = vmatprep.mubr.msk.bf16.mxu0 %vm294_vm1, %v914_v6  ;;  %v998_v8 = vld [vmem:[%s987_s5] sm:$0xf]  ;;  %v1001_v9 = vld [vmem:[%s987_s5 + $0x8] sm:$0xf]  ;;  %v209_v11 = vld [vmem:[%s987_s5 + $0xc] sm:$0x1] }
  0x14   : > { %880 = vmatmul.mubr.msk.bf16.vlgmr.msra.gmra.mrb[0].mxu0 %vm294_vm1, %v916_v7  ;;  %v216_v12 = vshrl.u32 %v998_v8, 16  ;;  %v219_v13 = vshll.u32 %v998_v8, 16  ;;  %v225_v14 = vshll.u32 %v208_v10, 16  ;;  %v230_v15 = vshrl.u32 %v1001_v9, 16  ;;  %v1015_v25 = vld [vmem:[%s987_s5 + $0x10] sm:$0xf] }
  0x15   : > { %884 = vmatpush3.bf16.msra.mxu0 %v918_v4  ;;  %v233_v16 = vshll.u32 %v1001_v9, 16  ;;  %v239_v17 = vshll.u32 %v209_v11, 16  ;;  %v1018_v26 = vld [vmem:[%s987_s5 + $0x18] sm:$0xf]  ;;  %v210_v28 = vld [vmem:[%s987_s5 + $0x14] sm:$0x1]  ;;  %v793_v32 = vcombine.low %v998_v8, %v1001_v9 }
  0x16   : > { %v218_v18 = vrot.slane %v216_v12, 4  ;;  %v221_v19 = vrot.slane %v219_v13, 5  ;;  %v227_v20 = vrot.slane %v225_v14, 5  ;;  %v232_v21 = vrot.slane %v230_v15, 4  ;;  %885 = vmatprep.subr.bf16.mxu0 %v920_v22  ;;  %v211_v29 = vld [vmem:[%s987_s5 + $0x1c] sm:$0x1] }
  0x17   : > { %v235_v23 = vrot.slane %v233_v16, 5  ;;  %v241_v24 = vrot.slane %v239_v17, 5  ;;  %v244_v30 = vshrl.u32 %v1015_v25, 16  ;;  %v247_v31 = vshll.u32 %v1015_v25, 16  ;;  %v813_v38 = vld [vmem:[%s987_s5 + $0x8] sm:$0xf] }
  0x18   : > { %v222_v27 = vor.u32 %v221_v19, %v218_v18  ;;  %v253_v35 = vshll.u32 %v210_v28, 16  ;;  %v258_v36 = vshrl.u32 %v1018_v26, 16  ;;  %v261_v37 = vshll.u32 %v1018_v26, 16  ;;  %v814_v43 = vld [vmem:[%s987_s5 + $0xc] sm:$0x1] }
  0x19   : > { %v236_v34 = vor.u32 %v235_v23, %v232_v21  ;;  %886 = vmatpush3.bf16.msra.mxu0 %v920_v22  ;;  %v246_v40 = vrot.slane %v244_v30, 4  ;;  %v249_v41 = vrot.slane %v247_v31, 5  ;;  %v267_v42 = vshll.u32 %v211_v29, 16  ;;  %v815_v48 = vld [vmem:[%s987_s5 + $0x10] sm:$0xf]  ;;  %v921_v21 = vld [vmem:[%s1087_s1 + $0x8] sm:$0xff]  }
  0x1a   : > { %v223_v39 = vrot.slane %v222_v27, 4  ;;  %v255_v45 = vrot.slane %v253_v35, 5  ;;  %v260_v46 = vrot.slane %v258_v36, 4  ;;  %v263_v47 = vrot.slane %v261_v37, 5  ;;  %v816_v52 = vld [vmem:[%s987_s5 + $0x14] sm:$0x1] }
  0x1b   : > { %v237_v44 = vrot.slane %v236_v34, 4  ;;  %v250_v50 = vor.u32 %v249_v41, %v246_v40  ;;  %v269_v51 = vrot.slane %v267_v42, 5  ;;  %v527_v53 = vshrl.u32 %v813_v38, 16  ;;  %v817_v58 = vld [vmem:[%s987_s5 + $0x18] sm:$0xf] }
  0x1c   : > { %v228_v49 = vsel %vm1028_vm3, %v223_v39, %v227_v20  ;;  %v264_v55 = vor.u32 %v263_v47, %v260_v46  ;;  %v530_v56 = vshll.u32 %v813_v38, 16  ;;  %v536_v57 = vshll.u32 %v814_v43, 16  ;;  %v818_v59 = vld [vmem:[%s987_s5 + $0x1c] sm:$0x1]  ;;  %v819_v0 = vld [vmem:[%s987_s5 + $0x20] sm:$0xf] }
  0x1d   : > { %v242_v54 = vsel %vm1028_vm3, %v237_v44, %v241_v24  ;;  %v251_v61 = vrot.slane %v250_v50, 4  ;;  %v529_v62 = vrot.slane %v527_v53, 4  ;;  %v541_v63 = vshrl.u32 %v815_v48, 16  ;;  %v820_v15 = vld [vmem:[%s987_s5 + $0x24] sm:$0x1] }
  0x1e   : > { %v787_v60 = vcombine.low %v228_v49, %v242_v54  ;;  %v265_v1 = vrot.slane %v264_v55, 4  ;;  %v532_v2 = vrot.slane %v530_v56, 5  ;;  %v538_v3 = vrot.slane %v536_v57, 5  ;;  %v831_v47 = vld [vmem:[%s1088_s2] ss:$0 sm:$0xff] }
  0x1f   : > { %v544_v4 = vshll.u32 %v815_v48, 16  ;;  %v256_v6 = vsel %vm1028_vm3, %v251_v61, %v255_v45  ;;  %v543_v7 = vrot.slane %v541_v63, 4  ;;  %v550_v10 = vshll.u32 %v816_v52, 16 }
  0x20   : > { %863 = vmatprep.mubr.msk.bf16.mxu1 %vm294_vm1, %v787_v60  ;;  %v555_v11 = vshrl.u32 %v817_v58, 16  ;;  %v270_v12 = vsel %vm1028_vm3, %v265_v1, %v269_v51  ;;  %v533_v13 = vor.u32 %v532_v2, %v529_v62  ;;  %v558_v16 = vshll.u32 %v817_v58, 16 }
  0x21   : > { %v546_v14 = vrot.slane %v544_v4, 5  ;;  %v788_v17 = vcombine.low %v256_v6, %v270_v12  ;;  %v552_v18 = vrot.slane %v550_v10, 5  ;;  %v564_v20 = vshll.u32 %v818_v59, 16 }
  0x22   : > { %v557_v19 = vrot.slane %v555_v11, 4  ;;  %v534_v22 = vrot.slane %v533_v13, 4  ;;  %v560_v24 = vrot.slane %v558_v16, 5  ;;  %v569_v27 = vshrl.u32 %v819_v0, 16 }
  0x23   : > { %v547_v23 = vor.u32 %v546_v14, %v543_v7  ;;  %864 = vmatmul.mubr.msk.bf16.vlgmr.msra.gmra.mrb[0].mxu1 %vm294_vm1, %v788_v17  ;;  %v572_v28 = vshll.u32 %v819_v0, 16  ;;  %v578_v29 = vshll.u32 %v820_v15, 16  ;;  %v566_v36 = vrot.slane %v564_v20, 5 }
  0x24   : > { %868 = vmatpush3.bf16.msra.mxu1 %v992_v5  ;;  %v539_v30 = vsel %vm1028_vm3, %v534_v22, %v538_v3  ;;  %v561_v34 = vor.u32 %v560_v24, %v557_v19  ;;  %v571_v35 = vrot.slane %v569_v27, 4  ;;  %871 = vmatprep.mubr.msk.bf16.mxu1 %vm294_vm1, %v793_v32  ;;  %v794_v32 = vcombine.low %v1015_v25, %v1018_v26  ;;  %v832_v25 = vld [vmem:[%s1089_s3] ss:$0 sm:$0xff] }
  0x25   : > { %v548_v31 = vrot.slane %v547_v23, 4  ;;  %v574_v37 = vrot.slane %v572_v28, 5  ;;  %869 = vmatprep.subr.bf16.mxu1 %v921_v21  ;;  %v580_v41 = vrot.slane %v578_v29, 5 }
  0x26   : > { %v562_v39 = vrot.slane %v561_v34, 4 }
  0x27   : > { %v553_v38 = vsel %vm1028_vm3, %v548_v31, %v552_v18  ;;  %v575_v40 = vor.u32 %v574_v37, %v571_v35 }
  0x28   : > { %v825_v5 = vcombine.low %v539_v30, %v553_v38  ;;  %870 = vmatpush3.bf16.msra.mxu1 %v921_v21  ;;  %v567_v42 = vsel %vm1028_vm3, %v562_v39, %v566_v36 }
  0x29   : > { %v576_v8 = vrot.slane %v575_v40, 4 }
  0x2a   : > { %887 = vmatprep.mubr.msk.bf16.mxu0 %vm294_vm1, %v825_v5 }
  0x2b   : > { %v581_v9 = vsel %vm1028_vm3, %v576_v8, %v580_v41 }
  0x2c   : > { %v826_v43 = vcombine.low %v567_v42, %v581_v9 }
  0x2e   : > { %888 = vmatmul.mubr.msk.bf16.vlgmr.msra.gmra.mrb[0].mxu0 %vm294_vm1, %v826_v43 }
  0x2f   : > { %872 = vmatmul.mubr.msk.bf16.vlgmr.msra.gmra.mrb[0].mxu1 %vm294_vm1, %v794_v32 }
 0x101   : > { %v889_v44 = vpop.f32.mrb[0].mxu0 }
 0x102   : > { %v645_v45 = vpop.f32.mrb[1].mxu0  ;;  %v873_v46 = vpop.f32.mrb[0].mxu1 }
 0x103   : > { %v890_v48 = vpop.f32.mrb[2].mxu0  ;;  %v891_v33 = vadd.f32 %v889_v44, %v873_v46  ;;  %v412_v49 = vpop.f32.mrb[1].mxu1 }
 0x104   : > { %v648_v50 = vpop.f32.mrb[3].mxu0  ;;  %v892_v26 = vadd.f32 %v645_v45, %v412_v49  ;;  %v874_v51 = vpop.f32.mrb[2].mxu1 }
 0x105   : > { %v673_v52 = vmul.f32 %v891_v33, %v831_v47  ;;  %v893_v53 = vadd.f32 %v890_v48, %v874_v51  ;;  %v415_v54 = vpop.f32.mrb[3].mxu1 }
 0x106   : > { %v671_v55 = vmul.f32 %v892_v26, %v831_v47  ;;  %v894_v56 = vadd.f32 %v648_v50, %v415_v54 }
 0x107   : > { %v684_v57 = vadd.f32 %v832_v25, %v673_v52  ;;  %v674_v58 = vmul.f32 %v893_v53, %v831_v47 }
 0x108   : > { %v682_v59 = vadd.f32 %v832_v25, %v671_v55  ;;  %v672_v60 = vmul.f32 %v894_v56, %v831_v47 }
 0x109   : > { %v692_v61 = vmul.f32 0.2, %v684_v57  ;;  %v685_v62 = vadd.f32 %v832_v25, %v674_v58  ;;  %vm688_vm4 = vcmp.ge.f32.partialorder %v684_v57, 0.0 }
 0x10a   : > { %vm686_vm5 = vcmp.ge.f32.partialorder %v682_v59, 0.0  ;;  %v690_v63 = vmul.f32 0.2, %v682_v59  ;;  %v683_v0 = vadd.f32 %v832_v25, %v672_v60 }
 0x10b   : > { %vm689_vm6 = vcmp.ge.f32.partialorder %v685_v62, 0.0  ;;  %v693_v1 = vmul.f32 0.2, %v685_v62  ;;  %v696_v4 = vsel %vm688_vm4, %v684_v57, %v692_v61 }
 0x10c   : > { %v694_v2 = vsel %vm686_vm5, %v682_v59, %v690_v63  ;;  %vm687_vm8 = vcmp.ge.f32.partialorder %v683_v0, 0.0  ;;  %v691_v3 = vmul.f32 0.2, %v683_v0  ;;  %v841_v12 = vpack.c.bf16 %v696_v4, %v696_v4 }
 0x10d   : > { %v839_v6 = vpack.c.bf16 %v694_v2, %v694_v2  ;;  %v697_v7 = vsel %vm689_vm6, %v685_v62, %v693_v1 }
 0x10e   : > { %v695_v10 = vsel %vm687_vm8, %v683_v0, %v691_v3  ;;  %v842_v13 = vpack.c.bf16 %v697_v7, %v697_v7  ;;  %717 = vst.msk [vmem:[%s197_s21 + $0x8] sm:$0xf] %vm714_vm7, %v841_v12 }
 0x10f   : > { %715 = vst.msk [vmem:[%s197_s21] sm:$0xf] %vm714_vm7, %v839_v6  ;;  %v840_v11 = vpack.c.bf16 %v695_v10, %v695_v10 }
 0x110   : > { %718 = vst.msk [vmem:[%s197_s21 + $0xc] sm:$0xf] %vm714_vm7, %v842_v13 }
 0x111   : > { %716 = vst.msk [vmem:[%s197_s21 + $0x4] sm:$0xf] %vm714_vm7, %v840_v11 }
 0x112 PF: > { %s14_s15 = sadd.s32 1, %s930_s15  }
 0x113   : > { %p11_p5 = scmp.ge.s32.totalorder %s14_s15, 4  }
 0x115   :  { %13 = sbr.rel (!%p11_p5) target bundleno = 1 (0x1), region = 70 }

// kernel: _lambda_.5
= control target key start
LH: loop header
LB: loop body
LE: loop exit
PB: predicated region body
PF: predicated region fallthrough
CT: control target
= control target key end

     0   :  { %s2315_s15 = smov 0   ;;  %s2850_s0 = inlined_call_operand.vmem [shape: bf16[2,10,10,8], index: 0, kind: input, shape index: {}]   ;;  %s2851_s1 = inlined_call_operand.vmem [shape: bf16[9,8,8], index: 1, kind: input, shape index: {}]   ;;  %s2852_s2 = inlined_call_operand.vmem [shape: f32[1,8], index: 2, kind: input, shape index: {}]   ;;  %s2853_s3 = inlined_call_operand.vmem [shape: f32[1,8], index: 3, kind: input, shape index: {}]   ;;  %s2854_s4 = inlined_call_operand.vmem [shape: bf16[128,8], index: 4, kind: output, shape index: {}]  }
   0x1 LB: > { %s2321_s16 = sadd.s32 4294967295, %s2288_s15   ;;  %p1858_p0 = scmp.ge.s32.totalorder %s2288_s15, 1  ;;  %s2288_s15 = sphi %s2315_s15, %s14_s15  }
   0x2   : > { %p162_p1 = scmp.lt.s32.totalorder %s2288_s15, 3 }
   0x4   : > { %p163_p2 = pnand %p1858_p0, %p162_p1 }
   0x5   : > { %v1862_v0 = vld [vmem:[%s2851_s1 + $0x4] sm:$0xf] (!%p163_p2)  ;;  %vm359_vm0 = vcmask (!%p163_p2), 1043456   ;;  %v2331_v1 = vld [vmem:[%s2851_s1 + $0x10] sm:$0xf] (!%p163_p2)  ;;  %p188_p3 = scmp.lt.s32.totalorder (!%p163_p2), %s2321_s16, 1 }
   0x6   : > { %166 = sbr.rel (%p163_p2) target bundleno = 342 (0x156), region = 36  ;;  %2251 = vmatprep.subr.msk.bf16.mxu1 (!%p163_p2), %vm359_vm0, %v1862_v0  ;;  %2255 = vmatprep.subr.msk.bf16.mxu0 (!%p163_p2), %vm359_vm0, %v2331_v1  ;;  %v361_v2 = vsel (!%p163_p2), %vm359_vm0, %v1862_v0, 0  ;;  %v2340_v3 = vsel (!%p163_p2), %vm359_vm0, %v2331_v1, 0  ;;  %v208_v4 = vld [vmem:[%s2851_s1] sm:$0xf] (!%p163_p2)  ;;  %vm346_vm3 = vcmask (!%p163_p2), 64512  }
   0x7   : > { %2096 = vmatpush3.bf16.msra.mxu1 (!%p163_p2), %v361_v2  ;;  %2136 = vmatpush3.bf16.msra.mxu0 (!%p163_p2), %v2340_v3  ;;  %v1954_v5 = vld [vmem:[%s2851_s1 + $0x14] sm:$0xf] (!%p163_p2)  ;;  %vm217_vm1 = vsmask.f32 (!%p163_p2), 3328  ;;  %vm218_vm2 = vsmask.f32 (!%p163_p2), 7440 }
   0x8   : > { %2252 = vmatprep.subr.msk.bf16.mxu1 (!%p163_p2), %vm359_vm0, %v208_v4  ;;  %2257 = vmatprep.subr.msk.bf16.mxu0 (!%p163_p2), %vm359_vm0, %v1954_v5  ;;  %v2377_v17 = vsel (!%p163_p2), %vm359_vm0, %v208_v4, 0  ;;  %v2390_v31 = vld [vmem:[%s2851_s1 + $0x18] sm:$0xf] (!%p163_p2)  ;;  %vm2394_vm4 = vmor (!%p163_p2), %vm217_vm1, %vm218_vm2  ;;  %v2406_v42 = vsel (!%p163_p2), %vm359_vm0, %v1954_v5, 0  ;;  %vm552_vm5 = vcmask (!%p163_p2), 1042432   ;;  %vm553_vm6 = vcmask (!%p163_p2), 1046532  }
   0x9   : > { %v2413_v47 = vsel (!%p163_p2), %vm359_vm0, %v2390_v31, 0  ;;  %vm2505_vm7 = vmor (!%p163_p2), %vm552_vm5, %vm553_vm6  ;;  %s1860_s14 = sshll.u32 (!%p163_p2), %s2321_s16, 3  ;;  %vm1789_vm10 = vcmask (!%p163_p2), 60416  }
   0xa   : > { %p194_p4 = scmp.lt.s32.totalorder (!%p163_p2), %s1860_s14, 15 }
   0xd   : > { %s189_s21 = scalar_select %p188_p3, %s2321_s16, 1 }
   0xe   : > { %s2860_s14 = smov (!%p194_p4, %s1860_s14), 15 }
   0xf   : > { %s2261_s26 = smul.u32 80, %s189_s21  ;;  %s1861_s16 = sshll.u32 %s2860_s14, 2 }
  0x10   : > { %s2829_s23 = scalar_lea.vmem %s2854_s4, %s1861_s16 }
  0x11   : > { %s2355_s29 = scalar_lea.vmem %s2850_s0, %s2261_s26 }
  0x12   : > { %v2358_v6 = vld [vmem:[%s2355_s29] sm:$0xf]  ;;  %v2361_v7 = vld [vmem:[%s2355_s29 + $0x8] sm:$0xf]  ;;  %v2364_v8 = vld [vmem:[%s2355_s29 + $0x4] sm:$0x1] }
  0x13   : > { %v2367_v9 = vld [vmem:[%s2355_s29 + $0xc] sm:$0x1]  ;;  %v221_v10 = vshrl.u32 %v2358_v6, 16  ;;  %v224_v11 = vshll.u32 %v2358_v6, 16  ;;  %v230_v12 = vshll.u32 %v2364_v8, 16  ;;  %v235_v13 = vshrl.u32 %v2361_v7, 16 }
  0x14   : > { %v238_v14 = vshll.u32 %v2361_v7, 16  ;;  %v244_v15 = vshll.u32 %v2367_v9, 16  ;;  %v1913_v16 = vld [vmem:[%s2355_s29 + $0x8] sm:$0xf]  ;;  %v2380_v22 = vld [vmem:[%s2355_s29 + $0xc] sm:$0x1] }
  0x15   : > { %v223_v18 = vrot.slane %v221_v10, 4  ;;  %v226_v19 = vrot.slane %v224_v11, 5  ;;  %v232_v20 = vrot.slane %v230_v12, 5  ;;  %v237_v21 = vrot.slane %v235_v13, 4  ;;  %v1915_v25 = vld [vmem:[%s2355_s29 + $0x10] sm:$0xf] }
  0x16   : > { %v240_v23 = vrot.slane %v238_v14, 5  ;;  %v246_v24 = vrot.slane %v244_v15, 5  ;;  %v2384_v26 = vld [vmem:[%s2355_s29 + $0x14] sm:$0x1]  ;;  %v825_v28 = vshrl.u32 %v1913_v16, 16  ;;  %v828_v29 = vshll.u32 %v1913_v16, 16 }
  0x17   : > { %v227_v27 = vor.u32 %v226_v19, %v223_v18  ;;  %v834_v30 = vshll.u32 %v2380_v22, 16  ;;  %v839_v34 = vshrl.u32 %v1915_v25, 16  ;;  %v842_v35 = vshll.u32 %v1915_v25, 16  ;;  %v2400_v37 = vld [vmem:[%s2355_s29 + $0x10] sm:$0xf] }
  0x18   : > { %v241_v33 = vor.u32 %v240_v23, %v237_v21  ;;  %v848_v36 = vshll.u32 %v2384_v26, 16  ;;  %v827_v39 = vrot.slane %v825_v28, 4  ;;  %v830_v40 = vrot.slane %v828_v29, 5  ;;  %v2403_v41 = vld [vmem:[%s2355_s29 + $0x18] sm:$0xf] }
  0x19   : > { %v228_v38 = vrot.slane %v227_v27, 4  ;;  %v841_v44 = vrot.slane %v839_v34, 4  ;;  %v844_v45 = vrot.slane %v842_v35, 5  ;;  %v2409_v46 = vld [vmem:[%s2355_s29 + $0x14] sm:$0x1]  ;;  %v836_v50 = vrot.slane %v834_v30, 5 }
  0x1a   : > { %v242_v43 = vrot.slane %v241_v33, 4  ;;  %v831_v49 = vor.u32 %v830_v40, %v827_v39  ;;  %v850_v51 = vrot.slane %v848_v36, 5  ;;  %v2420_v54 = vld [vmem:[%s2355_s29 + $0x1c] sm:$0x1]  ;;  %v249_v55 = vshrl.u32 %v2400_v37, 16 }
  0x1b   : > { %v233_v48 = vsel %vm2394_vm4, %v228_v38, %v232_v20  ;;  %v845_v53 = vor.u32 %v844_v45, %v841_v44  ;;  %v252_v56 = vshll.u32 %v2400_v37, 16  ;;  %v258_v59 = vshll.u32 %v2409_v46, 16  ;;  %v1917_v2 = vld [vmem:[%s2355_s29 + $0x18] sm:$0xf]  ;;  %v2434_v12 = vld [vmem:[%s2355_s29 + $0x1c] sm:$0x1] }
  0x1c   : > { %v247_v52 = vsel %vm2394_vm4, %v242_v43, %v246_v24  ;;  %v832_v58 = vrot.slane %v831_v49, 4  ;;  %v263_v60 = vshrl.u32 %v2403_v41, 16  ;;  %v251_v62 = vrot.slane %v249_v55, 4  ;;  %v1919_v18 = vld [vmem:[%s2355_s29 + $0x20] sm:$0xf] }
  0x1d   : > { %v1863_v57 = vcombine.low %v233_v48, %v247_v52  ;;  %v846_v61 = vrot.slane %v845_v53, 4  ;;  %v254_v63 = vrot.slane %v252_v56, 5  ;;  %v266_v0 = vshll.u32 %v2403_v41, 16  ;;  %v2440_v19 = vld [vmem:[%s2355_s29 + $0x24] sm:$0x1] }
  0x1e   : > { %v837_v4 = vsel %vm2394_vm4, %v832_v58, %v836_v50  ;;  %v1064_v5 = vrot.slane %v2380_v22, 5  ;;  %v265_v10 = vrot.slane %v263_v60, 4  ;;  %v272_v11 = vshll.u32 %v2420_v54, 16  ;;  %v2447_v36 = vld [vmem:[%s2355_s29 + $0x20] sm:$0xf] }
  0x1f   : > { %2097 = vmatprep.mubr.msk.bf16.mxu1 %vm346_vm3, %v1863_v57  ;;  %v851_v13 = vsel %vm2394_vm4, %v846_v61, %v850_v51  ;;  %v255_v14 = vor.u32 %v254_v63, %v251_v62  ;;  %v260_v15 = vrot.slane %v258_v59, 5  ;;  %v268_v16 = vrot.slane %v266_v0, 5  ;;  %v2452_v44 = vld [vmem:[%s2355_s29 + $0x24] sm:$0x1]  ;;  %v2456_v51 = vld [vmem:[%s2355_s29 + $0x28] sm:$0xf] }
  0x20   : > { %v1930_v20 = vcombine.low %v837_v4, %v851_v13  ;;  %v1068_v21 = vrot.slane %v2384_v26, 5  ;;  %v274_v23 = vrot.slane %v272_v11, 5  ;;  %v853_v24 = vshrl.u32 %v1917_v2, 16  ;;  %v2462_v56 = vld [vmem:[%s2355_s29 + $0x2c] sm:$0x1] }
  0x21   : > { %v256_v25 = vrot.slane %v255_v14, 4  ;;  %v269_v27 = vor.u32 %v268_v16, %v265_v10  ;;  %v856_v28 = vshll.u32 %v1917_v2, 16  ;;  %v862_v29 = vshll.u32 %v2434_v12, 16  ;;  %v2468_v62 = vld [vmem:[%s2355_s29 + $0x30] sm:$0xf] }
  0x22   : > { %2137 = vmatprep.mubr.msk.bf16.mxu0 %vm346_vm3, %v1930_v20  ;;  %v855_v30 = vrot.slane %v853_v24, 4  ;;  %v867_v33 = vshrl.u32 %v1919_v18, 16  ;;  %v870_v34 = vshll.u32 %v1919_v18, 16  ;;  %v876_v35 = vshll.u32 %v2440_v19, 16  ;;  %v2473_v63 = vld [vmem:[%s2851_s1 + $0x8] sm:$0xf] }
  0x23   : > { %v261_v38 = vsel %vm2394_vm4, %v256_v25, %v260_v15  ;;  %v270_v39 = vrot.slane %v269_v27, 4  ;;  %v858_v40 = vrot.slane %v856_v28, 5  ;;  %v864_v43 = vrot.slane %v862_v29, 5  ;;  %v2478_v11 = vld [vmem:[%s2355_s29 + $0x38] sm:$0xf] }
  0x24   : > { %v869_v45 = vrot.slane %v867_v33, 4  ;;  %v872_v48 = vrot.slane %v870_v34, 5  ;;  %v878_v49 = vrot.slane %v876_v35, 5  ;;  %v1072_v50 = vrot.slane %v2434_v12, 5  ;;  %v2483_v18 = vld [vmem:[%s2355_s29 + $0x34] sm:$0x1] }
  0x25   : > { %v275_v52 = vsel %vm2394_vm4, %v270_v39, %v274_v23  ;;  %v859_v53 = vor.u32 %v858_v40, %v855_v30  ;;  %v1076_v55 = vrot.slane %v2440_v19, 5  ;;  %v277_v57 = vshrl.u32 %v2447_v36, 16  ;;  %v2489_v25 = vld [vmem:[%s2355_s29 + $0x3c] sm:$0x1]  ;;  %v1938_v34 = vld [vmem:[%s2355_s29 + $0x8] sm:$0xe] }
  0x26   : > { %v1864_v58 = vcombine.low %v261_v38, %v275_v52  ;;  %v873_v59 = vor.u32 %v872_v48, %v869_v45  ;;  %v280_v60 = vshll.u32 %v2447_v36, 16  ;;  %v286_v61 = vshll.u32 %v2452_v44, 16  ;;  %v2558_v19 = vld [vmem:[%s2355_s29 + $0x44] sm:$0x1] }
  0x27   : > { %v860_v0 = vrot.slane %v859_v53, 4  ;;  %v279_v2 = vrot.slane %v277_v57, 4  ;;  %v291_v4 = vshrl.u32 %v2456_v51, 16  ;;  %v294_v10 = vshll.u32 %v2456_v51, 16  ;;  %v1941_v57 = vld [vmem:[%s2355_s29 + $0x20] sm:$0xe] }
  0x28   : > { %2098 = vmatmul.mubr.msk.bf16.vlgmr.msra.gmra.mrb[0].mxu1 %vm346_vm3, %v1864_v58  ;;  %v874_v13 = vrot.slane %v873_v59, 4  ;;  %v282_v14 = vrot.slane %v280_v60, 5  ;;  %v288_v15 = vrot.slane %v286_v61, 5  ;;  %v300_v16 = vshll.u32 %v2462_v56, 16 }
  0x29   : > { %2106 = vmatpush3.bf16.msra.mxu1 %v2377_v17  ;;  %v865_v20 = vsel %vm2394_vm4, %v860_v0, %v864_v43  ;;  %v293_v23 = vrot.slane %v291_v4, 4  ;;  %v296_v24 = vrot.slane %v294_v10, 5  ;;  %v305_v27 = vshrl.u32 %v2468_v62, 16  ;;  %v1939_v17 = vld [vmem:[%s2355_s29 + $0x10] sm:$0xe] }
  0x2a   : > { %v879_v28 = vsel %vm2394_vm4, %v874_v13, %v878_v49  ;;  %v283_v29 = vor.u32 %v282_v14, %v279_v2  ;;  %v302_v30 = vrot.slane %v300_v16, 5  ;;  %v308_v33 = vshll.u32 %v2468_v62, 16  ;;  %2253 = vmatprep.subr.msk.bf16.mxu1 %vm359_vm0, %v2473_v63  ;;  %v1940_v43 = vld [vmem:[%s2355_s29 + $0x18] sm:$0xe]  ;;  %v1942_v0 = vld [vmem:[%s2355_s29 + $0x28] sm:$0xe] }
  0x2b   : > { %v1931_v35 = vcombine.low %v865_v20, %v879_v28  ;;  %v297_v38 = vor.u32 %v296_v24, %v293_v23  ;;  %v307_v39 = vrot.slane %v305_v27, 4  ;;  %v314_v40 = vshll.u32 %v2483_v18, 16 }
  0x2c   : > { %v284_v45 = vrot.slane %v283_v29, 4  ;;  %v310_v48 = vrot.slane %v308_v33, 5  ;;  %v319_v49 = vshrl.u32 %v2478_v11, 16  ;;  %v322_v52 = vshll.u32 %v2478_v11, 16  ;;  %v2528_v29 = vld [vmem:[%s2355_s29 + $0x34] sm:$0x1] }
  0x2d   : > { %2138 = vmatmul.mubr.msk.bf16.vlgmr.msra.gmra.mrb[0].mxu0 %vm346_vm3, %v1931_v35  ;;  %v298_v58 = vrot.slane %v297_v38, 4  ;;  %v316_v59 = vrot.slane %v314_v40, 5  ;;  %v328_v60 = vshll.u32 %v2489_v25, 16  ;;  %v1946_v61 = vrot.slane %v1938_v34, 9  ;;  %v1944_v38 = vld [vmem:[%s2355_s29 + $0x38] sm:$0xe] }
  0x2e   : > { %2146 = vmatpush3.bf16.msra.mxu0 %v2406_v42  ;;  %v289_v2 = vsel %vm2394_vm4, %v284_v45, %v288_v15  ;;  %v311_v4 = vor.u32 %v310_v48, %v307_v39  ;;  %v321_v10 = vrot.slane %v319_v49, 4  ;;  %v324_v13 = vrot.slane %v322_v52, 5  ;;  %v2525_v42 = vld [vmem:[%s2355_s29 + $0x2c] sm:$0x1]  ;;  %v1945_v45 = vld [vmem:[%s2355_s29 + $0x40] sm:$0xe] }
  0x2f   : > { %v303_v14 = vsel %vm2394_vm4, %v298_v58, %v302_v30  ;;  %v330_v16 = vrot.slane %v328_v60, 5  ;;  %v1065_v20 = vsel %vm2505_vm7, %v1946_v61, %v1064_v5  ;;  %v1947_v23 = vrot.slane %v1939_v17, 9  ;;  %2258 = vmatprep.subr.msk.bf16.mxu0 %vm359_vm0, %v2390_v31  ;;  %v1943_v30 = vld [vmem:[%s2355_s29 + $0x30] sm:$0xe]  ;;  %v2536_v31 = vld [vmem:[%s2355_s29 + $0x3c] sm:$0x1] }
  0x30   : > { %v1865_v15 = vcombine.low %v289_v2, %v303_v14  ;;  %v312_v24 = vrot.slane %v311_v4, 4  ;;  %v325_v27 = vor.u32 %v324_v13, %v321_v10  ;;  %v1948_v28 = vrot.slane %v1940_v43, 9  ;;  %v2567_v48 = vld [vmem:[%s2851_s1 + $0xc] sm:$0xf]  ;;  %v529_v58 = vld [vmem:[%s2355_s29 + $0x8] sm:$0xe] }
  0x31   : > { %v1069_v22 = vsel %vm2505_vm7, %v1947_v23, %v1068_v21  ;;  %v1949_v5 = vrot.slane %v1941_v57, 9  ;;  %v1950_v33 = vrot.slane %v1942_v0, 9  ;;  %v1080_v39 = vrot.slane %v2525_v42, 5  ;;  %v531_v4 = vld [vmem:[%s2355_s29 + $0x18] sm:$0xe] }
  0x32   : > { %2101 = vmatprep.mubr.msk.bf16.mxu1 %vm346_vm3, %v1865_v15  ;;  %v317_v34 = vsel %vm2394_vm4, %v312_v24, %v316_v59  ;;  %v326_v17 = vrot.slane %v325_v27, 4  ;;  %v1955_v35 = vcombine.low %v1065_v20, %v1069_v22  ;;  %v1073_v26 = vsel %vm2505_vm7, %v1948_v28, %v1072_v50  ;;  %v530_v59 = vld [vmem:[%s2355_s29 + $0x10] sm:$0xe]  ;;  %v532_v20 = vld [vmem:[%s2355_s29 + $0x20] sm:$0xe] }
  0x33   : > { %v1077_v21 = vsel %vm2505_vm7, %v1949_v5, %v1076_v55  ;;  %v1951_v40 = vrot.slane %v1943_v30, 9  ;;  %v1084_v43 = vrot.slane %v2528_v29, 5  ;;  %v1871_v50 = vcombine.low %v2358_v6, %v2361_v7  ;;  %v1996_v55 = vld [vmem:[%s2851_s1 + $0x1c] sm:$0xf]  ;;  %v528_v7 = vld [vmem:[%s2355_s29] sm:$0xe] }
  0x34   : > { %v331_v12 = vsel %vm2394_vm4, %v326_v17, %v330_v16  ;;  %2147 = vmatprep.mubr.msk.bf16.mxu0 %vm346_vm3, %v1955_v35  ;;  %v1956_v52 = vcombine.low %v1073_v26, %v1077_v21  ;;  %v1081_v57 = vsel %vm2505_vm7, %v1950_v33, %v1080_v39  ;;  %v557_v60 = vrot.slane %v2364_v8, 5  ;;  %v1980_v5 = vld [vmem:[%s2355_s29 + $0x10] sm:$0xf]  ;;  %v533_v17 = vld [vmem:[%s2355_s29 + $0x28] sm:$0xe] }
  0x35   : > { %v1866_v49 = vcombine.low %v317_v34, %v331_v12  ;;  %v1085_v6 = vsel %vm2505_vm7, %v1951_v40, %v1084_v43  ;;  %v1952_v0 = vrot.slane %v1944_v38, 9  ;;  %v1088_v2 = vrot.slane %v2536_v31, 5  ;;  %v534_v35 = vld [vmem:[%s2355_s29 + $0x30] sm:$0xe]  ;;  %v1982_v26 = vld [vmem:[%s2355_s29 + $0x18] sm:$0xf] }
  0x36   : > { %v1957_v61 = vcombine.low %v1081_v57, %v1085_v6  ;;  %v561_v10 = vrot.slane %v2367_v9, 5  ;;  %v565_v13 = vrot.slane %v2409_v46, 5  ;;  %v1953_v14 = vrot.slane %v1945_v45, 9  ;;  %v2274_v38 = vld [vmem:[%s2355_s29 + $0x10] ss:$8 sps:$4 sm:$0xff]  }
  0x37   : > { %2102 = vmatmul.mubr.msk.bf16.gmra.mrb[4].mxu1 %vm346_vm3, %v1866_v49  ;;  %v1092_v16 = vrot.slane %v2558_v19, 5  ;;  %v569_v23 = vrot.slane %v2420_v54, 5  ;;  %v1879_v8 = vrot.slane %v528_v7, 9  ;;  %v1880_v15 = vrot.slane %v529_v58, 9  ;;  %v2630_v21 = vld [vmem:[%s2355_s29 + $0x38] sm:$0xe] }
  0x38   : > { %2107 = vmatprep.mubr.msk.bf16.mxu1 %vm346_vm3, %v1871_v50  ;;  %v1881_v24 = vrot.slane %v530_v59, 9  ;;  %v614_v9 = vsel %vm359_vm0, %v2473_v63, 0  ;;  %v2590_v46 = vsel %vm359_vm0, %v1996_v55, 0  ;;  %v1882_v27 = vrot.slane %v531_v4, 9  ;;  %v2633_v39 = vld [vmem:[%s2355_s29 + $0x14] sm:$0x1] }
  0x39   : > { %2148 = vmatmul.mubr.msk.bf16.vlgmr.msra.gmra.mrb[0].mxu0 %vm346_vm3, %v1956_v52  ;;  %v2594_v54 = vsel %vm359_vm0, %v2567_v48, 0  ;;  %v1089_v28 = vsel %vm2505_vm7, %v1952_v0, %v1088_v2  ;;  %v1093_v63 = vsel %vm2505_vm7, %v1953_v14, %v1092_v16  ;;  %v1883_v30 = vrot.slane %v532_v20, 9  ;;  %v1986_v52 = vld [vmem:[%s2355_s29 + $0x28] sm:$0xf]  ;;  %v2652_v59 = vld [vmem:[%s2355_s29 + $0x1c] sm:$0x1] }
  0x3a   : > { %2156 = vmatpush3.bf16.msra.mxu0 %v2413_v47  ;;  %2151 = vmatprep.mubr.msk.bf16.mxu0 %vm346_vm3, %v1957_v61  ;;  %v573_v22 = vrot.slane %v2452_v44, 5  ;;  %v1872_v33 = vcombine.low %v2400_v37, %v2403_v41  ;;  %v2609_v47 = vsel %vm2505_vm7, %v1879_v8, %v557_v60  ;;  %v2613_v34 = vsel %vm2505_vm7, %v1880_v15, %v561_v10  ;;  %v2660_v2 = vld [vmem:[%s2355_s29 + $0x24] sm:$0x1]  ;;  %v1988_v20 = vld [vmem:[%s2355_s29 + $0x30] sm:$0xf] }
  0x3b   : > { %2259 = vmatprep.subr.msk.bf16.mxu0 %vm359_vm0, %v1996_v55  ;;  %v1873_v44 = vcombine.low %v2447_v36, %v2456_v51  ;;  %v2623_v37 = vsel %vm2505_vm7, %v1881_v24, %v565_v13  ;;  %v2627_v41 = vsel %vm2505_vm7, %v1882_v27, %v569_v23  ;;  %v1958_v40 = vcombine.low %v1089_v28, %v1093_v63  ;;  %v1984_v36 = vld [vmem:[%s2355_s29 + $0x20] sm:$0xf]  ;;  %v2671_v15 = vld [vmem:[%s2355_s29 + $0x2c] sm:$0x1]  ;;  %v2276_v27 = vld [vmem:[%s2355_s29 + $0x30] ss:$8 sps:$4 sm:$0xff]  }
  0x3c   : > { %v1874_v43 = vcombine.low %v2468_v62, %v2478_v11  ;;  %v1332_v12 = vshrl.u32 %v1980_v5, 16  ;;  %v1335_v50 = vshll.u32 %v1980_v5, 16  ;;  %v1888_v51 = vcombine.low %v2609_v47, %v2613_v34  ;;  %v2275_v23 = vld [vmem:[%s2355_s29 + $0x20] ss:$8 sps:$4 sm:$0xff]   ;;  %v1990_v5 = vld [vmem:[%s2355_s29 + $0x38] sm:$0xf] }
  0x3d   : > { %v2642_v45 = vsel %vm2505_vm7, %v1883_v30, %v573_v22  ;;  %v1884_v55 = vrot.slane %v533_v17, 9  ;;  %v1346_v49 = vshrl.u32 %v1982_v26, 16  ;;  %v1889_v62 = vcombine.low %v2623_v37, %v2627_v41  ;;  %v2682_v17 = vld [vmem:[%s2355_s29 + $0x34] sm:$0x1] }
  0x3e   : > { %v577_v11 = vrot.slane %v2462_v56, 5  ;;  %v1334_v57 = vrot.slane %v1332_v12, 4  ;;  %v1337_v6 = vrot.slane %v1335_v50, 5  ;;  %v1885_v7 = vrot.slane %v534_v35, 9  ;;  %v1992_v12 = vld [vmem:[%s2355_s29 + $0x40] sm:$0xf] }
  0x3f   : > { %2108 = vmatmul.mubr.msk.bf16.vlgmr.msra.gmra.mrb[0].mxu1 %vm346_vm3, %v1872_v33  ;;  %v581_v58 = vrot.slane %v2483_v18, 5  ;;  %v1348_v60 = vrot.slane %v1346_v49, 4  ;;  %v1349_v61 = vshll.u32 %v1982_v26, 16  ;;  %v1886_v56 = vrot.slane %v2630_v21, 9  ;;  %v2692_v21 = vld [vmem:[%s2355_s29 + $0x3c] sm:$0x1] }
  0x40   : > { %2116 = vmatpush3.bf16.msra.mxu1 %v614_v9  ;;  %2111 = vmatprep.mubr.msk.bf16.mxu1 %vm346_vm3, %v1873_v44  ;;  %v1341_v0 = vshll.u32 %v2633_v39, 16  ;;  %v1360_v18 = vshrl.u32 %v1984_v36, 16  ;;  %v1363_v4 = vshll.u32 %v1984_v36, 16  ;;  %v1338_v10 = vor.u32 %v1337_v6, %v1334_v57  ;;  %v1994_v6 = vld [vmem:[%s2355_s29 + $0x48] sm:$0xf] }
  0x41   : > { %2152 = vmatmul.mubr.msk.bf16.gmra.mrb[4].mxu0 %vm346_vm3, %v1958_v40  ;;  %2254 = vmatprep.subr.msk.bf16.mxu1 %vm359_vm0, %v2567_v48  ;;  %v1351_v13 = vrot.slane %v1349_v61, 5  ;;  %v1374_v14 = vshrl.u32 %v1986_v52, 16  ;;  %v1377_v16 = vshll.u32 %v1986_v52, 16  ;;  %v2667_v48 = vsel %vm2505_vm7, %v1884_v55, %v577_v11 }
  0x42   : > { %2157 = vmatprep.mubr.msk.bf16.mxu0 %vm346_vm3, %v2274_v38  ;;  %v1355_v8 = vshll.u32 %v2652_v59, 16  ;;  %v1362_v24 = vrot.slane %v1360_v18, 4  ;;  %v1365_v9 = vrot.slane %v1363_v4, 5  ;;  %v585_v28 = vrot.slane %v2489_v25, 5  ;;  %v2689_v25 = vld [vmem:[%s2851_s1 + $0x20] sm:$0xf] }
  0x43   : > { %v1352_v63 = vor.u32 %v1351_v13, %v1348_v60  ;;  %v1376_v30 = vrot.slane %v1374_v14, 4  ;;  %v1379_v22 = vrot.slane %v1377_v16, 5  ;;  %v2678_v33 = vsel %vm2505_vm7, %v1885_v7, %v581_v58  ;;  %v2717_v13 = vld [vmem:[%s2355_s29 + $0x44] sm:$0x1] }
  0x44   : > { %v1343_v47 = vrot.slane %v1341_v0, 5  ;;  %v1369_v34 = vshll.u32 %v2660_v2, 16  ;;  %v1388_v35 = vshrl.u32 %v1988_v20, 16  ;;  %v1890_v26 = vcombine.low %v2642_v45, %v2667_v48 }
  0x45   : > { %v1339_v44 = vrot.slane %v1338_v10, 4  ;;  %v1366_v38 = vor.u32 %v1365_v9, %v1362_v24  ;;  %v1391_v40 = vshll.u32 %v1988_v20, 16  ;;  %v1353_v50 = vrot.slane %v1352_v63, 4  ;;  %v2720_v20 = vld [vmem:[%s2355_s29 + $0x4c] sm:$0x1] }
  0x46   : > { %v1357_v36 = vrot.slane %v1355_v8, 5  ;;  %v1390_v55 = vrot.slane %v1388_v35, 4  ;;  %v1402_v49 = vshrl.u32 %v1990_v5, 16  ;;  %v2699_v45 = vsel %vm2505_vm7, %v1886_v56, %v585_v28  ;;  %v2277_v8 = vld [vmem:[%s2355_s29 + $0x40] ss:$8 sps:$4 sm:$0xff]  }
  0x47   : > { %2112 = vmatmul.mubr.msk.bf16.gmra.mrb[4].mxu1 %vm346_vm3, %v1874_v43  ;;  %v1380_v52 = vor.u32 %v1379_v22, %v1376_v30  ;;  %v1383_v11 = vshll.u32 %v2671_v15, 16  ;;  %v1393_v57 = vrot.slane %v1391_v40, 5  ;;  %v2704_v7 = vrot.slane %v1369_v34, 5 }
  0x48   : > { %2117 = vmatprep.mubr.msk.bf16.mxu1 %vm346_vm3, %v1888_v51  ;;  %v1397_v43 = vshll.u32 %v2682_v17, 16  ;;  %v1404_v58 = vrot.slane %v1402_v49, 4  ;;  %v1405_v60 = vshll.u32 %v1990_v5, 16  ;;  %v1344_v51 = vsel %vm2394_vm4, %v1339_v44, %v1343_v47  ;;  %v1923_v49 = vld [vmem:[%s2355_s29 + $0x30] sm:$0xf] }
  0x49   : > { %2158 = vmatmul.mubr.msk.bf16.vlgmr.msra.gmra.mrb[0].mxu0 %vm346_vm3, %v2275_v23  ;;  %v1367_v61 = vrot.slane %v1366_v38, 4  ;;  %v1394_v56 = vor.u32 %v1393_v57, %v1390_v55  ;;  %v1416_v0 = vshrl.u32 %v1992_v12, 16  ;;  %v1358_v18 = vsel %vm2394_vm4, %v1353_v50, %v1357_v36  ;;  %v2005_v38 = vld [vmem:[%s2355_s29 + $0x10] sm:$0xe]  ;;  %v2006_v50 = vld [vmem:[%s2355_s29 + $0x18] sm:$0xe] }
  0x4a   : > { %2166 = vmatpush3.bf16.msra.mxu0 %v2590_v46  ;;  %2161 = vmatprep.mubr.msk.bf16.mxu0 %vm346_vm3, %v2276_v27  ;;  %v1407_v4 = vrot.slane %v1405_v60, 5  ;;  %v1411_v10 = vshll.u32 %v2692_v21, 16  ;;  %v1419_v46 = vshll.u32 %v1992_v12, 16  ;;  %v1381_v14 = vrot.slane %v1380_v52, 4  ;;  %v2278_v57 = vld [vmem:[%s2355_s29 + $0x8] ss:$8 sps:$4 sm:$0xff]  }
  0x4b   : > { %2260 = vmatprep.subr.msk.bf16.mxu0 %vm359_vm0, %v2689_v25  ;;  %v1385_v16 = vrot.slane %v1383_v11, 5  ;;  %v1418_v23 = vrot.slane %v1416_v0, 4  ;;  %v1430_v48 = vshrl.u32 %v1994_v6, 16  ;;  %v1399_v24 = vrot.slane %v1397_v43, 5 }
  0x4c   : > { %v1408_v9 = vor.u32 %v1407_v4, %v1404_v58  ;;  %v1421_v27 = vrot.slane %v1419_v46, 5  ;;  %v1433_v28 = vshll.u32 %v1994_v6, 16  ;;  %v1997_v63 = vcombine.low %v1344_v51, %v1358_v18 }
  0x4d   : > { %v1395_v30 = vrot.slane %v1394_v56, 4  ;;  %v1425_v22 = vshll.u32 %v2717_v13, 16  ;;  %v1432_v5 = vrot.slane %v1430_v48, 4  ;;  %v1413_v34 = vrot.slane %v1411_v10, 5 }
  0x4e   : > { %v1409_v47 = vrot.slane %v1408_v9, 4  ;;  %v1435_v35 = vrot.slane %v1433_v28, 5  ;;  %v1439_v44 = vshll.u32 %v2720_v20, 16  ;;  %v1891_v40 = vcombine.low %v2678_v33, %v2699_v45  ;;  %v1927_v28 = vld [vmem:[%s2355_s29 + $0x40] sm:$0xf] }
  0x4f   : > { %2118 = vmatmul.mubr.msk.bf16.vlgmr.msra.gmra.mrb[0].mxu1 %vm346_vm3, %v1889_v62  ;;  %v1422_v12 = vor.u32 %v1421_v27, %v1418_v23  ;;  %v1372_v37 = vsel %vm2394_vm4, %v1367_v61, %v2704_v7  ;;  %v1386_v41 = vsel %vm2394_vm4, %v1381_v14, %v1385_v16  ;;  %v1921_v62 = vld [vmem:[%s2355_s29 + $0x28] sm:$0xf]  ;;  %v1400_v33 = vsel %vm2394_vm4, %v1395_v30, %v1399_v24  ;;  %v1925_v27 = vld [vmem:[%s2355_s29 + $0x38] sm:$0xf] }
  0x50   : > { %2126 = vmatpush3.bf16.msra.mxu1 %v2594_v54  ;;  %2121 = vmatprep.mubr.msk.bf16.mxu1 %vm346_vm3, %v1890_v26  ;;  %v1436_v54 = vor.u32 %v1435_v35, %v1432_v5  ;;  %v1427_v26 = vrot.slane %v1425_v22, 5  ;;  %v2013_v36 = vrot.slane %v2005_v38, 9  ;;  %v1571_v55 = vrot.slane %v2633_v39, 5  ;;  %v2280_v38 = vld [vmem:[%s2355_s29 + $0x28] ss:$8 sps:$4 sm:$0xff]  }
  0x51   : > { %2162 = vmatmul.mubr.msk.bf16.gmra.mrb[4].mxu0 %vm346_vm3, %v2277_v8  ;;  %2256 = vmatprep.subr.msk.bf16.mxu1 %vm359_vm0, %v2331_v1  ;;  %v1414_v45 = vsel %vm2394_vm4, %v1409_v47, %v1413_v34  ;;  %v1441_v52 = vrot.slane %v1439_v44, 5  ;;  %v2014_v11 = vrot.slane %v2006_v50, 9  ;;  %v1575_v1 = vrot.slane %v2652_v59, 5  ;;  %v2007_v59 = vld [vmem:[%s2355_s29 + $0x20] sm:$0xe] }
  0x52   : > { %2167 = vmatprep.mubr.msk.bf16.mxu0 %vm346_vm3, %v1997_v63  ;;  %v1423_v6 = vrot.slane %v1422_v12, 4  ;;  %v1437_v7 = vrot.slane %v1436_v54, 4  ;;  %v881_v43 = vshrl.u32 %v1921_v62, 16  ;;  %v884_v58 = vshll.u32 %v1921_v62, 16  ;;  %v2279_v63 = vld [vmem:[%s2355_s29 + $0x18] ss:$8 sps:$4 sm:$0xff]  }
  0x53   : > { %v1998_v60 = vcombine.low %v1372_v37, %v1386_v41  ;;  %v895_v51 = vshrl.u32 %v1923_v49, 16  ;;  %v898_v61 = vshll.u32 %v1923_v49, 16  ;;  %v1999_v56 = vcombine.low %v1400_v33, %v1414_v45  ;;  %v2009_v44 = vld [vmem:[%s2355_s29 + $0x30] sm:$0xe] }
  0x54   : > { %v883_v39 = vrot.slane %v881_v43, 4  ;;  %v886_v0 = vrot.slane %v884_v58, 5  ;;  %v1628_v18 = vsel %vm359_vm0, %v2689_v25, 0  ;;  %v1428_v46 = vsel %vm2394_vm4, %v1423_v6, %v1427_v26  ;;  %v2008_v25 = vld [vmem:[%s2355_s29 + $0x28] sm:$0xe] }
  0x55   : > { %v897_v4 = vrot.slane %v895_v51, 4  ;;  %v900_v10 = vrot.slane %v898_v61, 5  ;;  %v1442_v14 = vsel %vm2394_vm4, %v1437_v7, %v1441_v52  ;;  %v1572_v16 = vsel %vm2505_vm7, %v2013_v36, %v1571_v55  ;;  %v2011_v6 = vld [vmem:[%s2355_s29 + $0x40] sm:$0xe]  ;;  %v2012_v7 = vld [vmem:[%s2355_s29 + $0x48] sm:$0xe] }
  0x56   : > { %v1576_v23 = vsel %vm2505_vm7, %v2014_v11, %v1575_v1  ;;  %v887_v48 = vor.u32 %v886_v0, %v883_v39  ;;  %v890_v8 = vshll.u32 %v2525_v42, 16  ;;  %v904_v9 = vshll.u32 %v2528_v29, 16  ;;  %v2010_v42 = vld [vmem:[%s2355_s29 + $0x38] sm:$0xe] }
  0x57   : > { %2122 = vmatmul.mubr.msk.bf16.gmra.mrb[4].mxu1 %vm346_vm3, %v1891_v40  ;;  %v901_v24 = vor.u32 %v900_v10, %v897_v4  ;;  %v2015_v30 = vrot.slane %v2007_v59, 9  ;;  %v1579_v22 = vrot.slane %v2660_v2, 5  ;;  %v2000_v5 = vcombine.low %v1428_v46, %v1442_v14 }
  0x58   : > { %2127 = vmatprep.mubr.msk.bf16.mxu1 %vm346_vm3, %v2278_v57  ;;  %v2022_v47 = vcombine.low %v1572_v16, %v1576_v23  ;;  %v2016_v34 = vrot.slane %v2008_v25, 9  ;;  %v1583_v35 = vrot.slane %v2671_v15, 5  ;;  %v909_v40 = vshrl.u32 %v1925_v27, 16  ;;  %v2281_v57 = vld [vmem:[%s2355_s29 + $0x38] ss:$8 sps:$4 sm:$0xff]  }
  0x59   : > { %2168 = vmatmul.mubr.msk.bf16.vlgmr.msra.gmra.mrb[0].mxu0 %vm346_vm3, %v1998_v60  ;;  %v912_v12 = vshll.u32 %v1925_v27, 16  ;;  %v923_v29 = vshrl.u32 %v1927_v28, 16  ;;  %v926_v50 = vshll.u32 %v1927_v28, 16  ;;  %v888_v37 = vrot.slane %v887_v48, 4  ;;  %v2030_v27 = vld [vmem:[%s2852_s2] ss:$0 sm:$0xff] }
  0x5a   : > { %2176 = vmatpush3.bf16.msra.mxu0 %v1628_v18  ;;  %2171 = vmatprep.mubr.msk.bf16.mxu0 %vm346_vm3, %v1999_v56  ;;  %v892_v41 = vrot.slane %v890_v8, 5  ;;  %v902_v54 = vrot.slane %v901_v24, 4  ;;  %v906_v62 = vrot.slane %v904_v9, 5  ;;  %v2017_v33 = vrot.slane %v2009_v44, 9 }
  0x5b   : > { %v1587_v26 = vrot.slane %v2682_v17, 5  ;;  %v2018_v2 = vrot.slane %v2010_v42, 9  ;;  %v1591_v36 = vrot.slane %v2692_v21, 5  ;;  %v911_v15 = vrot.slane %v909_v40, 4 }
  0x5c   : > { %v914_v55 = vrot.slane %v912_v12, 5  ;;  %v925_v49 = vrot.slane %v923_v29, 4  ;;  %v928_v45 = vrot.slane %v926_v50, 5  ;;  %v918_v52 = vshll.u32 %v2536_v31, 16 }
  0x5d   : > { %v893_v17 = vsel %vm2394_vm4, %v888_v37, %v892_v41  ;;  %v907_v21 = vsel %vm2394_vm4, %v902_v54, %v906_v62  ;;  %v1584_v11 = vsel %vm2505_vm7, %v2016_v34, %v1583_v35  ;;  %v1588_v1 = vsel %vm2505_vm7, %v2017_v33, %v1587_v26 }
  0x5e   : > { %v1592_v31 = vsel %vm2505_vm7, %v2018_v2, %v1591_v36  ;;  %v932_v43 = vshll.u32 %v2558_v19, 16  ;;  %v1932_v58 = vcombine.low %v893_v17, %v907_v21  ;;  %v915_v60 = vor.u32 %v914_v55, %v911_v15 }
  0x5f   : > { %2128 = vmatmul.mubr.msk.bf16.vlgmr.msra.gmra.mrb[0].mxu1 %vm346_vm3, %v2279_v63  ;;  %v929_v51 = vor.u32 %v928_v45, %v925_v49  ;;  %v2024_v56 = vcombine.low %v1588_v1, %v1592_v31  ;;  %v2019_v39 = vrot.slane %v2011_v6, 9  ;;  %v1595_v0 = vrot.slane %v2717_v13, 5  ;;  %v2031_v63 = vld [vmem:[%s2853_s3] ss:$0 sm:$0xff] }
  0x60   : > { %2186 = vmatpush3.bf16.msra.mxu1 %v2340_v3  ;;  %2131 = vmatprep.mubr.msk.bf16.mxu1 %vm346_vm3, %v2280_v38  ;;  %v1580_v3 = vsel %vm2505_vm7, %v2015_v30, %v1579_v22  ;;  %v2020_v18 = vrot.slane %v2012_v7, 9  ;;  %v1599_v59 = vrot.slane %v2720_v20, 5  ;;  %v920_v4 = vrot.slane %v918_v52, 5 }
  0x61   : > { %2172 = vmatmul.mubr.msk.bf16.gmra.mrb[4].mxu0 %vm346_vm3, %v2000_v5  ;;  %v2023_v61 = vcombine.low %v1580_v3, %v1584_v11  ;;  %v934_v10 = vrot.slane %v932_v43, 5  ;;  %v916_v46 = vrot.slane %v915_v60, 4  ;;  %v930_v19 = vrot.slane %v929_v51, 4 }
  0x62   : > { %2177 = vmatprep.mubr.msk.bf16.mxu0 %vm346_vm3, %v2022_v47  ;;  %v1596_v14 = vsel %vm2505_vm7, %v2019_v39, %v1595_v0  ;;  %v1600_v13 = vsel %vm2505_vm7, %v2020_v18, %v1599_v59 }
  0x63   : > { %v921_v20 = vsel %vm2394_vm4, %v916_v46, %v920_v4  ;;  %v935_v16 = vsel %vm2394_vm4, %v930_v19, %v934_v10  ;;  %v2025_v23 = vcombine.low %v1596_v14, %v1600_v13 }
  0x64   : > { %v1933_v25 = vcombine.low %v921_v20, %v935_v16 }
  0x67   : > { %2132 = vmatmul.mubr.msk.bf16.gmra.mrb[4].mxu1 %vm346_vm3, %v2281_v57 }
  0x68   : > { %2141 = vmatprep.mubr.msk.bf16.mxu1 %vm346_vm3, %v1932_v58 }
  0x69   : > { %2178 = vmatmul.mubr.msk.bf16.vlgmr.msra.gmra.mrb[0].mxu0 %vm346_vm3, %v2023_v61 }
  0x6a   : > { %2181 = vmatprep.mubr.msk.bf16.mxu0 %vm346_vm3, %v2024_v56 }
  0x71   : > { %2182 = vmatmul.mubr.msk.bf16.gmra.mrb[4].mxu0 %vm346_vm3, %v2025_v23 }
  0x73   : > { %2142 = vmatmul.mubr.msk.bf16.vlgmr.msra.gmra.mrb[4].mxu1 %vm346_vm3, %v1933_v25 }
 0x132   : > { %v2129_v48 = vpop.f32.mrb[0].mxu1 }
 0x133   : > { %v769_v8 = vpop.f32.mrb[1].mxu1 }
 0x134   : > { %v2130_v24 = vpop.f32.mrb[2].mxu1 }
 0x135   : > { %v772_v9 = vpop.f32.mrb[3].mxu1 }
 0x13c   : > { %v2179_v53 = vpop.f32.mrb[0].mxu0 }
 0x13d   : > { %v2187_v28 = vadd.f32 %v2179_v53, %v2129_v48  ;;  %v1664_v32 = vpop.f32.mrb[1].mxu0 }
 0x13e   : > { %v2188_v30 = vadd.f32 %v1664_v32, %v769_v8  ;;  %v2180_v22 = vpop.f32.mrb[2].mxu0 }
 0x13f   : > { %v1712_v5 = vmul.f32 %v2187_v28, %v2030_v27  ;;  %v2189_v47 = vadd.f32 %v2180_v22, %v2130_v24  ;;  %v1667_v34 = vpop.f32.mrb[3].mxu0 }
 0x140   : > { %v1710_v35 = vmul.f32 %v2188_v30, %v2030_v27  ;;  %v2190_v44 = vadd.f32 %v1667_v34, %v772_v9 }
 0x141   : > { %v1727_v42 = vadd.f32 %v2031_v63, %v1712_v5  ;;  %v1713_v38 = vmul.f32 %v2189_v47, %v2030_v27 }
 0x142   : > { %v1725_v40 = vadd.f32 %v2031_v63, %v1710_v35  ;;  %v1711_v12 = vmul.f32 %v2190_v44, %v2030_v27 }
 0x143   : > { %vm1735_vm8 = vcmp.ge.f32.partialorder %v1727_v42, 0.0  ;;  %v1743_v29 = vmul.f32 0.2, %v1727_v42  ;;  %v1728_v50 = vadd.f32 %v2031_v63, %v1713_v38 }
 0x144   : > { %vm1733_vm9 = vcmp.ge.f32.partialorder %v1725_v40, 0.0  ;;  %v1741_v37 = vmul.f32 0.2, %v1725_v40  ;;  %v1726_v41 = vadd.f32 %v2031_v63, %v1711_v12  ;;  %v2183_v54 = vpop.f32.mrb[4].mxu0 }
 0x145   : > { %v1751_v62 = vsel %vm1735_vm8, %v1727_v42, %v1743_v29  ;;  %vm1736_vm11 = vcmp.ge.f32.partialorder %v1728_v50, 0.0  ;;  %v1744_v33 = vmul.f32 0.2, %v1728_v50  ;;  %v1680_v26 = vpop.f32.mrb[5].mxu0 }
 0x146   : > { %v2044_v2 = vpack.c.bf16 %v1751_v62, %v1751_v62  ;;  %v1749_v36 = vsel %vm1733_vm9, %v1725_v40, %v1741_v37  ;;  %vm1734_vm12 = vcmp.ge.f32.partialorder %v1726_v41, 0.0  ;;  %v1742_v15 = vmul.f32 0.2, %v1726_v41  ;;  %v2143_v55 = vpop.f32.mrb[4].mxu1  ;;  %v2184_v49 = vpop.f32.mrb[6].mxu0 }
 0x147   : > { %v2042_v45 = vpack.c.bf16 %v1749_v36, %v1749_v36  ;;  %v1752_v52 = vsel %vm1736_vm11, %v1728_v50, %v1744_v33  ;;  %v2191_v17 = vadd.f32 %v2183_v54, %v2143_v55  ;;  %v1015_v21 = vpop.f32.mrb[5].mxu1  ;;  %v1683_v3 = vpop.f32.mrb[7].mxu0 }
 0x148   : > { %1792 = vst.msk [vmem:[%s2829_s23 + $0x8] sm:$0xf] %vm1789_vm10, %v2044_v2  ;;  %v2045_v11 = vpack.c.bf16 %v1752_v52, %v1752_v52  ;;  %v1750_v1 = vsel %vm1734_vm12, %v1726_v41, %v1742_v15  ;;  %v2192_v31 = vadd.f32 %v1680_v26, %v1015_v21  ;;  %v2144_v57 = vpop.f32.mrb[6].mxu1 }
 0x149   : > { %1790 = vst.msk [vmem:[%s2829_s23] sm:$0xf] %vm1789_vm10, %v2042_v45  ;;  %v2043_v6 = vpack.c.bf16 %v1750_v1, %v1750_v1  ;;  %v1716_v7 = vmul.f32 %v2191_v17, %v2030_v27  ;;  %v2193_v43 = vadd.f32 %v2184_v49, %v2144_v57  ;;  %v1018_v58 = vpop.f32.mrb[7].mxu1 }
 0x14a   : > { %1793 = vst.msk [vmem:[%s2829_s23 + $0xc] sm:$0xf] %vm1789_vm10, %v2045_v11  ;;  %v1714_v60 = vmul.f32 %v2192_v31, %v2030_v27  ;;  %v2194_v51 = vadd.f32 %v1683_v3, %v1018_v58 }
 0x14b   : > { %1791 = vst.msk [vmem:[%s2829_s23 + $0x4] sm:$0xf] %vm1789_vm10, %v2043_v6  ;;  %v1731_v61 = vadd.f32 %v2031_v63, %v1716_v7  ;;  %v1717_v56 = vmul.f32 %v2193_v43, %v2030_v27 }
 0x14c   : > { %v1729_v39 = vadd.f32 %v2031_v63, %v1714_v60  ;;  %v1715_v0 = vmul.f32 %v2194_v51, %v2030_v27 }
 0x14d   : > { %vm1739_vm13 = vcmp.ge.f32.partialorder %v1731_v61, 0.0  ;;  %v1747_v18 = vmul.f32 0.2, %v1731_v61  ;;  %v1732_v59 = vadd.f32 %v2031_v63, %v1717_v56 }
 0x14e   : > { %vm1737_vm14 = vcmp.ge.f32.partialorder %v1729_v39, 0.0  ;;  %v1745_v4 = vmul.f32 0.2, %v1729_v39  ;;  %v1730_v10 = vadd.f32 %v2031_v63, %v1715_v0 }
 0x14f   : > { %v1755_v46 = vsel %vm1739_vm13, %v1731_v61, %v1747_v18  ;;  %vm1740_vm15 = vcmp.ge.f32.partialorder %v1732_v59, 0.0  ;;  %v1748_v19 = vmul.f32 0.2, %v1732_v59 }
 0x150   : > { %v2048_v14 = vpack.c.bf16 %v1755_v46, %v1755_v46  ;;  %v1753_v13 = vsel %vm1737_vm14, %v1729_v39, %v1745_v4  ;;  %vm1738_vm0 = vcmp.ge.f32.partialorder %v1730_v10, 0.0  ;;  %v1746_v20 = vmul.f32 0.2, %v1730_v10 }
 0x151   : > { %v2046_v16 = vpack.c.bf16 %v1753_v13, %v1753_v13  ;;  %v1756_v23 = vsel %vm1740_vm15, %v1732_v59, %v1748_v19 }
 0x152   : > { %1796 = vst.msk [vmem:[%s2829_s23 + $0x18] sm:$0xf] %vm1789_vm10, %v2048_v14  ;;  %v2049_v25 = vpack.c.bf16 %v1756_v23, %v1756_v23  ;;  %v1754_v48 = vsel %vm1738_vm0, %v1730_v10, %v1746_v20 }
 0x153   : > { %1794 = vst.msk [vmem:[%s2829_s23 + $0x10] sm:$0xf] %vm1789_vm10, %v2046_v16  ;;  %v2047_v8 = vpack.c.bf16 %v1754_v48, %v1754_v48 }
 0x154   : > { %1797 = vst.msk [vmem:[%s2829_s23 + $0x1c] sm:$0xf] %vm1789_vm10, %v2049_v25 }
 0x155   : > { %1795 = vst.msk [vmem:[%s2829_s23 + $0x14] sm:$0xf] %vm1789_vm10, %v2047_v8 }
 0x156 PF: > { %s14_s15 = sadd.s32 1, %s2288_s15  }
 0x157   : > { %p11_p5 = scmp.ge.s32.totalorder %s14_s15, 4  }
 0x159   :  { %13 = sbr.rel (!%p11_p5) target bundleno = 1 (0x1), region = 76 }

</bundles_post_ra>
